<compile_context>
chip_gen: v5e
topology: v5e:2x2
jax: 0.10.0
libtpu: 0.0.40
codegen_flags: <defaults>
</compile_context>

<pallas_src>
import functools

import jax
import jax.numpy as jnp
import numpy as np
from jax import lax
from jax.experimental import pallas as pl
from jax.experimental.pallas import tpu as pltpu

PAD = 2   # spatial zero-padding baked into xpad; covers both dil=1 and dil=2 branches
EPS = 1e-5


def sk_kernel(xcol_ref, w_ref, p_ref, out_ref, *, B, HW, Cout, inv_hw):
    """Single invocation, whole batch.

    xcol_ref : (2, 9*Cin, B*HW) bf16   im2col activations, one per branch
    w_ref    : (2, Cout, 9*Cin) bf16   grouped-conv weights with BN scale folded in
    p_ref    : (R, d)           f32    packed params:
                 rows [0, Cout)        : wz   (fc weight, BN1d folded)
                 rows [Cout, 2*Cout)   : wd   (fc1 - fc2 weight)
                 rows [2*Cout, 3*Cout) : col0 sh1, col1 sh2, col2 bd
                 row  3*Cout           : bz   (fc bias, BN1d folded)
    out_ref  : (Cout, B*HW)     bf16   lane-dense output block
    """
    # Branch convs: one wide-K matmul each, N = B*HW (bf16 in, f32 MXU accumulate).
    acc1 = jnp.dot(w_ref[0], xcol_ref[0], preferred_element_type=jnp.float32)
    acc2 = jnp.dot(w_ref[1], xcol_ref[1], preferred_element_type=jnp.float32)

    # Unpack the consolidated parameter block (static, sublane-aligned slices).
    wz = p_ref[0:Cout, :]                      # (Cout, d)
    wd = p_ref[Cout:2 * Cout, :]               # (Cout, d)
    sh1 = p_ref[2 * Cout:3 * Cout, 0:1]        # (Cout, 1)
    sh2 = p_ref[2 * Cout:3 * Cout, 1:2]        # (Cout, 1)
    bd = p_ref[2 * Cout:3 * Cout, 2:3]         # (Cout, 1)
    bz = p_ref[3 * Cout:3 * Cout + 1, :]       # (1, d)

    # BN scale is already folded into the weights; only shift + ReLU here.
    u1 = jnp.maximum(acc1 + sh1, 0.0)          # (Cout, B*HW) f32
    u2 = jnp.maximum(acc2 + sh2, 0.0)

    # Per batch element (static unroll, B is tiny): GAP -> fc -> gate -> blend.
    for b in range(B):
        sl = slice(b * HW, (b + 1) * HW)
        # Global average pool over this batch element's spatial positions.
        s_b = (jnp.sum(u1[:, sl], axis=1, keepdims=True) +
               jnp.sum(u2[:, sl], axis=1, keepdims=True)) * inv_hw          # (Cout, 1)
        # fc (+ folded BatchNorm1d) + ReLU.
        z_b = jnp.maximum(jnp.sum(wz * s_b, axis=0, keepdims=True) + bz, 0.0)  # (1, d)
        # Two-way softmax over branches == sigmoid of the fc1 - fc2 logit diff.
        logit = jnp.sum(wd * z_b, axis=1, keepdims=True) + bd               # (Cout, 1)
        g = 1.0 / (1.0 + jnp.exp(-logit))      # exact sigmoid (tiny EUP/VPU op)
        # out = g * u1 + (1 - g) * u2, stored lane-dense (256-lane aligned slices).
        out_ref[:, sl] = (u2[:, sl] + g * (u1[:, sl] - u2[:, sl])).astype(out_ref.dtype)


def sk_layer_pallas(x_nchw, params):
    B, Cin, H, W = x_nchw.shape
    Cout = params["w"].shape[-1]
    d = params["wz"].shape[-1]
    HW = H * W
    K9 = 9 * Cin
    N = B * HW
    assert d >= 3  # packed-param layout needs >= 3 columns (always true: d >= 32)

    # --- im2col in the wrapper (layout plumbing, not compute hoisting) ---------
    xpad = jnp.pad(x_nchw, ((0, 0), (0, 0), (PAD, PAD), (PAD, PAD)))

    def im2col(dil):
        taps = []
        for ky in range(3):
            for kx in range(3):
                oy = PAD + (ky - 1) * dil
                ox = PAD + (kx - 1) * dil
                taps.append(xpad[:, :, oy:oy + H, ox:ox + W].reshape(B, Cin, HW))
        col = jnp.concatenate(taps, axis=1)                     # (B, 9*Cin, HW)
        # fold batch into the matmul N axis: (9*Cin, B*HW)
        return jnp.transpose(col, (1, 0, 2)).reshape(K9, N)

    xcol = jnp.stack([im2col(1), im2col(2)], axis=0).astype(jnp.bfloat16)  # (2,K9,N)

    # --- parameter plumbing: fold BN scale into the bf16 conv weights ----------
    wk = jnp.transpose(params["w"], (0, 3, 1, 2)).reshape(2, Cout, K9)     # f32
    sc = jnp.swapaxes(params["sc"], 1, 2)                                  # (2,Cout,1)
    wk = (wk * sc).astype(jnp.bfloat16)                                    # scale folded

    # --- pack the six tiny parameter tensors into ONE f32 array ----------------
    sh = jnp.swapaxes(params["sh"], 1, 2)[..., 0]        # (2, Cout)
    wd = (params["w1"] - params["w2"]).T                 # (Cout, d)
    bd = (params["b1"] - params["b2"]).T[:, 0]           # (Cout,)
    R = ((3 * Cout + 1 + 7) // 8) * 8                    # sublane-aligned row count
    P = jnp.zeros((R, d), jnp.float32)
    P = P.at[0:Cout, :].set(params["wz"])
    P = P.at[Cout:2 * Cout, :].set(wd)
    P = P.at[2 * Cout:3 * Cout, 0].set(sh[0])
    P = P.at[2 * Cout:3 * Cout, 1].set(sh[1])
    P = P.at[2 * Cout:3 * Cout, 2].set(bd)
    P = P.at[3 * Cout, :].set(params["bz"][0])

    kernel = functools.partial(sk_kernel, B=B, HW=HW, Cout=Cout, inv_hw=1.0 / HW)

    out = pl.pallas_call(
        kernel,
        out_shape=jax.ShapeDtypeStruct((Cout, N), jnp.bfloat16),
        grid_spec=pltpu.PrefetchScalarGridSpec(
            num_scalar_prefetch=0,
            grid=(1,),                       # single step: whole batch in one shot
            in_specs=[
                pl.BlockSpec((2, K9, N), lambda i: (0, 0, 0)),     # im2col acts
                pl.BlockSpec((2, Cout, K9), lambda i: (0, 0, 0)),  # conv weights
                pl.BlockSpec((R, d), lambda i: (0, 0)),            # packed params
            ],
            out_specs=pl.BlockSpec((Cout, N), lambda i: (0, 0)),
        ),
        compiler_params=pltpu.CompilerParams(
            dimension_semantics=("arbitrary",)),
    )(xcol, wk, P)

    # (Cout, B*HW) -> (B, Cout, H, W): XLA-side layout plumbing.
    return jnp.transpose(out.reshape(Cout, B, H, W), (1, 0, 2, 3))


def init_params(key, inplanes, planes, groups, ratio):
    """Deterministic synthetic parameters, shapes matching SKLayer.__init__."""
    d = max(planes // ratio, 32)
    cin_g = inplanes // groups
    cout_g = planes // groups
    ks = list(jax.random.split(key, 24))
    ki = iter(ks)

    def branch(kw, kb, kbn):
        # grouped Conv2d weight: (planes, inplanes//groups, 3, 3), bias: (planes,)
        w_g = jax.random.normal(kw, (planes, cin_g, 3, 3), jnp.float32) * 0.1
        b_conv = jax.random.normal(kb, (planes,), jnp.float32) * 0.1
        kbn = jax.random.split(kbn, 4)
        gamma = jax.random.uniform(kbn[0], (planes,), jnp.float32, 0.5, 1.5)
        beta = jax.random.normal(kbn[1], (planes,), jnp.float32) * 0.1
        mean = jax.random.normal(kbn[2], (planes,), jnp.float32) * 0.1
        var = jax.random.uniform(kbn[3], (planes,), jnp.float32, 0.5, 1.5)
        # dense block-diagonal HWIO weight implementing the grouped conv
        w_dense = jnp.zeros((3, 3, inplanes, planes), jnp.float32)
        for g in range(groups):
            blk = jnp.transpose(w_g[g * cout_g:(g + 1) * cout_g], (2, 3, 1, 0))
            w_dense = w_dense.at[:, :, g * cin_g:(g + 1) * cin_g,
                                 g * cout_g:(g + 1) * cout_g].set(blk)
        scale = gamma / jnp.sqrt(var + EPS)
        shift = beta - mean * scale + b_conv * scale
        return w_dense.reshape(9, inplanes, planes), scale, shift

    w1d, sc1, sh1 = branch(next(ki), next(ki), next(ki))
    w2d, sc2, sh2 = branch(next(ki), next(ki), next(ki))

    # fc: Linear(planes, d) + BatchNorm1d(d) folded
    wfc = jax.random.normal(next(ki), (d, planes), jnp.float32) * 0.1
    bfc = jax.random.normal(next(ki), (d,), jnp.float32) * 0.1
    gamma1 = jax.random.uniform(next(ki), (d,), jnp.float32, 0.5, 1.5)
    beta1 = jax.random.normal(next(ki), (d,), jnp.float32) * 0.1
    mean1 = jax.random.normal(next(ki), (d,), jnp.float32) * 0.1
    var1 = jax.random.uniform(next(ki), (d,), jnp.float32, 0.5, 1.5)
    g1 = gamma1 / jnp.sqrt(var1 + EPS)
    wz = wfc.T * g1[None, :]                         # (planes, d)
    bz = ((bfc - mean1) * g1 + beta1)[None, :]       # (1, d)

    # fc1 / fc2: Linear(d, planes)
    w1fc = jax.random.normal(next(ki), (planes, d), jnp.float32) * 0.1
    b1 = jax.random.normal(next(ki), (planes,), jnp.float32) * 0.1
    w2fc = jax.random.normal(next(ki), (planes, d), jnp.float32) * 0.1
    b2 = jax.random.normal(next(ki), (planes,), jnp.float32) * 0.1

    return dict(
        w=jnp.stack([w1d, w2d]),                     # (2, 9, Cin, Cout)
        sc=jnp.stack([sc1, sc2])[:, None, :],        # (2, 1, Cout)
        sh=jnp.stack([sh1, sh2])[:, None, :],        # (2, 1, Cout)
        wz=wz, bz=bz,                                # (Cout, d), (1, d)
        w1=w1fc.T, b1=b1[None, :],                   # (d, Cout), (1, Cout)
        w2=w2fc.T, b2=b2[None, :],
    )


def sk_layer_ref(x_nchw, params):
    """Pure-JAX f32 reference (same eval-mode BN folding), NCHW like PyTorch."""
    B, Cin, H, W = x_nchw.shape
    Cout = params["w"].shape[-1]
    us = []
    for br, dil in enumerate((1, 2)):
        w_hwio = params["w"][br].reshape(3, 3, Cin, Cout)
        conv = lax.conv_general_dilated(
            x_nchw, w_hwio, window_strides=(1, 1),
            padding=[(dil, dil), (dil, dil)], rhs_dilation=(dil, dil),
            dimension_numbers=("NCHW", "HWIO", "NCHW"))
        u = jnp.maximum(conv * params["sc"][br][0][None, :, None, None]
                        + params["sh"][br][0][None, :, None, None], 0.0)
        us.append(u)
    u1, u2 = us
    s = jnp.mean(u1 + u2, axis=(2, 3))                        # (B, Cout)
    z = jnp.maximum(s @ params["wz"] + params["bz"], 0.0)     # (B, d)
    a1 = z @ params["w1"] + params["b1"]
    a2 = z @ params["w2"] + params["b2"]
    attn = jax.nn.softmax(jnp.stack([a1, a2], axis=1), axis=1)
    return (u1 * attn[:, 0][:, :, None, None] +
            u2 * attn[:, 1][:, :, None, None])


if __name__ == "__main__":
    B, H, W = 2, 16, 16
    inplanes, planes, groups, ratio = 32, 32, 8, 16

    key = jax.random.PRNGKey(0)
    kx, kp = jax.random.split(key)
    x = jax.random.normal(kx, (B, inplanes, H, W), jnp.float32)   # NCHW, like PyTorch
    params = init_params(kp, inplanes, planes, groups, ratio)

    sk_layer = jax.jit(sk_layer_pallas)
    out = jax.block_until_ready(sk_layer(x, params))
    assert out.shape == (B, planes, H, W)

    ref = jax.block_until_ready(sk_layer_ref(x, params))
    # Loose-ish tolerance: bf16 MXU inputs (f32 accumulate) + bf16 output store;
    # all BN / attention math is f32.
    np.testing.assert_allclose(np.asarray(out).astype(np.float32), np.asarray(ref),
                               rtol=5e-2, atol=5e-2)
    print("KERNEL_OK")
</pallas_src>

<mosaic_0001>
module attributes {stable_mosaic.version = 11 : i64} {
  func.func @sk_kernel(%arg0: i32, %arg1: memref<2x288x512xbf16, #tpu.memory_space<vmem>>, %arg2: memref<2x32x288xbf16, #tpu.memory_space<vmem>>, %arg3: memref<104x32xf32, #tpu.memory_space<vmem>>, %arg4: memref<32x512xbf16, #tpu.memory_space<vmem>>) attributes {dimension_semantics = [#tpu.dimension_semantics<arbitrary>], iteration_bounds = array<i64: 1>, scalar_prefetch = 0 : i64, scratch_operands = 0 : i64, tpu.core_type = #tpu.core_type<tc>, window_params = [{pipeline_mode = #tpu.pipeline_mode<synchronous>, transform_indices = @transform_0, window_bounds = array<i64: 2, 288, 512>}, {pipeline_mode = #tpu.pipeline_mode<synchronous>, transform_indices = @transform_1, window_bounds = array<i64: 2, 32, 288>}, {pipeline_mode = #tpu.pipeline_mode<synchronous>, transform_indices = @transform_2, window_bounds = array<i64: 104, 32>}, {pipeline_mode = #tpu.pipeline_mode<synchronous>, transform_indices = @transform_3, window_bounds = array<i64: 32, 512>}]} {
    %c0 = arith.constant 0 : index
    %c0_0 = arith.constant 0 : index
    %c0_1 = arith.constant 0 : index
    %0 = vector.load %arg2[%c0, %c0_0, %c0_1] : memref<2x32x288xbf16, #tpu.memory_space<vmem>>, vector<1x32x288xbf16>
    %1 = vector.shape_cast %0 : vector<1x32x288xbf16> to vector<32x288xbf16>
    %c0_2 = arith.constant 0 : index
    %c0_3 = arith.constant 0 : index
    %c0_4 = arith.constant 0 : index
    %2 = vector.load %arg1[%c0_2, %c0_3, %c0_4] : memref<2x288x512xbf16, #tpu.memory_space<vmem>>, vector<1x288x512xbf16>
    %3 = vector.shape_cast %2 : vector<1x288x512xbf16> to vector<288x512xbf16>
    %cst = arith.constant dense<0.000000e+00> : vector<32x512xf32>
    %4 = tpu.matmul %1, %3, %cst {dimension_numbers = #tpu.dot_dimension_numbers<[1], [0], [0], [1], [0, 0, 1, 1], [], []>} : vector<32x288xbf16>, vector<288x512xbf16>, vector<32x512xf32> -> vector<32x512xf32>
    %c1 = arith.constant 1 : index
    %c0_5 = arith.constant 0 : index
    %c0_6 = arith.constant 0 : index
    %5 = vector.load %arg2[%c1, %c0_5, %c0_6] : memref<2x32x288xbf16, #tpu.memory_space<vmem>>, vector<1x32x288xbf16>
    %6 = vector.shape_cast %5 : vector<1x32x288xbf16> to vector<32x288xbf16>
    %c1_7 = arith.constant 1 : index
    %c0_8 = arith.constant 0 : index
    %c0_9 = arith.constant 0 : index
    %7 = vector.load %arg1[%c1_7, %c0_8, %c0_9] : memref<2x288x512xbf16, #tpu.memory_space<vmem>>, vector<1x288x512xbf16>
    %8 = vector.shape_cast %7 : vector<1x288x512xbf16> to vector<288x512xbf16>
    %cst_10 = arith.constant dense<0.000000e+00> : vector<32x512xf32>
    %9 = tpu.matmul %6, %8, %cst_10 {dimension_numbers = #tpu.dot_dimension_numbers<[1], [0], [0], [1], [0, 0, 1, 1], [], []>} : vector<32x288xbf16>, vector<288x512xbf16>, vector<32x512xf32> -> vector<32x512xf32>
    %c0_11 = arith.constant 0 : index
    %c0_12 = arith.constant 0 : index
    %10 = vector.load %arg3[%c0_11, %c0_12] : memref<104x32xf32, #tpu.memory_space<vmem>>, vector<32x32xf32>
    %c32 = arith.constant 32 : index
    %c0_13 = arith.constant 0 : index
    %11 = vector.load %arg3[%c32, %c0_13] : memref<104x32xf32, #tpu.memory_space<vmem>>, vector<32x32xf32>
    %c64 = arith.constant 64 : index
    %c0_14 = arith.constant 0 : index
    %12 = vector.load %arg3[%c64, %c0_14] : memref<104x32xf32, #tpu.memory_space<vmem>>, vector<32x1xf32>
    %c64_15 = arith.constant 64 : index
    %c1_16 = arith.constant 1 : index
    %13 = vector.load %arg3[%c64_15, %c1_16] : memref<104x32xf32, #tpu.memory_space<vmem>>, vector<32x1xf32>
    %c64_17 = arith.constant 64 : index
    %c2 = arith.constant 2 : index
    %14 = vector.load %arg3[%c64_17, %c2] : memref<104x32xf32, #tpu.memory_space<vmem>>, vector<32x1xf32>
    %c96 = arith.constant 96 : index
    %c0_18 = arith.constant 0 : index
    %15 = vector.load %arg3[%c96, %c0_18] : memref<104x32xf32, #tpu.memory_space<vmem>>, vector<1x32xf32>
    %16 = vector.broadcast %12 : vector<32x1xf32> to vector<32x512xf32>
    %17 = arith.addf %4, %16 : vector<32x512xf32>
    %cst_19 = arith.constant 0.000000e+00 : f32
    %18 = vector.broadcast %cst_19 : f32 to vector<32x512xf32>
    %19 = arith.maximumf %17, %18 : vector<32x512xf32>
    %20 = vector.broadcast %13 : vector<32x1xf32> to vector<32x512xf32>
    %21 = arith.addf %9, %20 : vector<32x512xf32>
    %cst_20 = arith.constant 0.000000e+00 : f32
    %22 = vector.broadcast %cst_20 : f32 to vector<32x512xf32>
    %23 = arith.maximumf %21, %22 : vector<32x512xf32>
    %24 = vector.extract_strided_slice %19 {offsets = [0, 0], sizes = [32, 256], strides = [1, 1]} : vector<32x512xf32> to vector<32x256xf32>
    %cst_21 = arith.constant dense<0.000000e+00> : vector<32xf32>
    %25 = vector.multi_reduction <add>, %24, %cst_21 [1] : vector<32x256xf32> to vector<32xf32>
    %26 = vector.shape_cast %25 : vector<32xf32> to vector<32x1xf32>
    %27 = vector.extract_strided_slice %23 {offsets = [0, 0], sizes = [32, 256], strides = [1, 1]} : vector<32x512xf32> to vector<32x256xf32>
    %cst_22 = arith.constant dense<0.000000e+00> : vector<32xf32>
    %28 = vector.multi_reduction <add>, %27, %cst_22 [1] : vector<32x256xf32> to vector<32xf32>
    %29 = vector.shape_cast %28 : vector<32xf32> to vector<32x1xf32>
    %30 = arith.addf %26, %29 : vector<32x1xf32>
    %cst_23 = arith.constant 3.906250e-03 : f32
    %31 = vector.broadcast %cst_23 : f32 to vector<32x1xf32>
    %32 = arith.mulf %30, %31 : vector<32x1xf32>
    %33 = vector.broadcast %32 : vector<32x1xf32> to vector<32x32xf32>
    %34 = arith.mulf %10, %33 : vector<32x32xf32>
    %cst_24 = arith.constant dense<0.000000e+00> : vector<32xf32>
    %35 = vector.multi_reduction <add>, %34, %cst_24 [0] : vector<32x32xf32> to vector<32xf32>
    %36 = vector.shape_cast %35 : vector<32xf32> to vector<1x32xf32>
    %37 = arith.addf %36, %15 : vector<1x32xf32>
    %cst_25 = arith.constant 0.000000e+00 : f32
    %38 = vector.broadcast %cst_25 : f32 to vector<1x32xf32>
    %39 = arith.maximumf %37, %38 : vector<1x32xf32>
    %40 = vector.broadcast %39 : vector<1x32xf32> to vector<32x32xf32>
    %41 = arith.mulf %11, %40 : vector<32x32xf32>
    %cst_26 = arith.constant dense<0.000000e+00> : vector<32xf32>
    %42 = vector.multi_reduction <add>, %41, %cst_26 [1] : vector<32x32xf32> to vector<32xf32>
    %43 = vector.shape_cast %42 : vector<32xf32> to vector<32x1xf32>
    %44 = arith.addf %43, %14 : vector<32x1xf32>
    %cst_27 = arith.constant 0.000000e+00 : f32
    %45 = vector.broadcast %cst_27 : f32 to vector<32x1xf32>
    %46 = arith.subf %45, %44 : vector<32x1xf32>
    %47 = math.exp %46 : vector<32x1xf32>
    %cst_28 = arith.constant 1.000000e+00 : f32
    %48 = vector.broadcast %cst_28 : f32 to vector<32x1xf32>
    %49 = arith.addf %48, %47 : vector<32x1xf32>
    %cst_29 = arith.constant 1.000000e+00 : f32
    %50 = vector.broadcast %cst_29 : f32 to vector<32x1xf32>
    %51 = arith.divf %50, %49 : vector<32x1xf32>
    %52 = vector.extract_strided_slice %23 {offsets = [0, 0], sizes = [32, 256], strides = [1, 1]} : vector<32x512xf32> to vector<32x256xf32>
    %53 = vector.extract_strided_slice %19 {offsets = [0, 0], sizes = [32, 256], strides = [1, 1]} : vector<32x512xf32> to vector<32x256xf32>
    %54 = vector.extract_strided_slice %23 {offsets = [0, 0], sizes = [32, 256], strides = [1, 1]} : vector<32x512xf32> to vector<32x256xf32>
    %55 = arith.subf %53, %54 : vector<32x256xf32>
    %56 = vector.broadcast %51 : vector<32x1xf32> to vector<32x256xf32>
    %57 = arith.mulf %56, %55 : vector<32x256xf32>
    %58 = arith.addf %52, %57 : vector<32x256xf32>
    %59 = arith.truncf %58 : vector<32x256xf32> to vector<32x256xbf16>
    %c0_30 = arith.constant 0 : index
    %c0_31 = arith.constant 0 : index
    %60 = vector.load %arg4[%c0_30, %c0_31] : memref<32x512xbf16, #tpu.memory_space<vmem>>, vector<32x256xbf16>
    tpu.vector_store %arg4[%c0_30, %c0_31], %59 {strides = array<i32>} : memref<32x512xbf16, #tpu.memory_space<vmem>>, vector<32x256xbf16>,
    %61 = vector.extract_strided_slice %19 {offsets = [0, 256], sizes = [32, 256], strides = [1, 1]} : vector<32x512xf32> to vector<32x256xf32>
    %cst_32 = arith.constant dense<0.000000e+00> : vector<32xf32>
    %62 = vector.multi_reduction <add>, %61, %cst_32 [1] : vector<32x256xf32> to vector<32xf32>
    %63 = vector.shape_cast %62 : vector<32xf32> to vector<32x1xf32>
    %64 = vector.extract_strided_slice %23 {offsets = [0, 256], sizes = [32, 256], strides = [1, 1]} : vector<32x512xf32> to vector<32x256xf32>
    %cst_33 = arith.constant dense<0.000000e+00> : vector<32xf32>
    %65 = vector.multi_reduction <add>, %64, %cst_33 [1] : vector<32x256xf32> to vector<32xf32>
    %66 = vector.shape_cast %65 : vector<32xf32> to vector<32x1xf32>
    %67 = arith.addf %63, %66 : vector<32x1xf32>
    %cst_34 = arith.constant 3.906250e-03 : f32
    %68 = vector.broadcast %cst_34 : f32 to vector<32x1xf32>
    %69 = arith.mulf %67, %68 : vector<32x1xf32>
    %70 = vector.broadcast %69 : vector<32x1xf32> to vector<32x32xf32>
    %71 = arith.mulf %10, %70 : vector<32x32xf32>
    %cst_35 = arith.constant dense<0.000000e+00> : vector<32xf32>
    %72 = vector.multi_reduction <add>, %71, %cst_35 [0] : vector<32x32xf32> to vector<32xf32>
    %73 = vector.shape_cast %72 : vector<32xf32> to vector<1x32xf32>
    %74 = arith.addf %73, %15 : vector<1x32xf32>
    %cst_36 = arith.constant 0.000000e+00 : f32
    %75 = vector.broadcast %cst_36 : f32 to vector<1x32xf32>
    %76 = arith.maximumf %74, %75 : vector<1x32xf32>
    %77 = vector.broadcast %76 : vector<1x32xf32> to vector<32x32xf32>
    %78 = arith.mulf %11, %77 : vector<32x32xf32>
    %cst_37 = arith.constant dense<0.000000e+00> : vector<32xf32>
    %79 = vector.multi_reduction <add>, %78, %cst_37 [1] : vector<32x32xf32> to vector<32xf32>
    %80 = vector.shape_cast %79 : vector<32xf32> to vector<32x1xf32>
    %81 = arith.addf %80, %14 : vector<32x1xf32>
    %cst_38 = arith.constant 0.000000e+00 : f32
    %82 = vector.broadcast %cst_38 : f32 to vector<32x1xf32>
    %83 = arith.subf %82, %81 : vector<32x1xf32>
    %84 = math.exp %83 : vector<32x1xf32>
    %cst_39 = arith.constant 1.000000e+00 : f32
    %85 = vector.broadcast %cst_39 : f32 to vector<32x1xf32>
    %86 = arith.addf %85, %84 : vector<32x1xf32>
    %cst_40 = arith.constant 1.000000e+00 : f32
    %87 = vector.broadcast %cst_40 : f32 to vector<32x1xf32>
    %88 = arith.divf %87, %86 : vector<32x1xf32>
    %89 = vector.extract_strided_slice %23 {offsets = [0, 256], sizes = [32, 256], strides = [1, 1]} : vector<32x512xf32> to vector<32x256xf32>
    %90 = vector.extract_strided_slice %19 {offsets = [0, 256], sizes = [32, 256], strides = [1, 1]} : vector<32x512xf32> to vector<32x256xf32>
    %91 = vector.extract_strided_slice %23 {offsets = [0, 256], sizes = [32, 256], strides = [1, 1]} : vector<32x512xf32> to vector<32x256xf32>
    %92 = arith.subf %90, %91 : vector<32x256xf32>
    %93 = vector.broadcast %88 : vector<32x1xf32> to vector<32x256xf32>
    %94 = arith.mulf %93, %92 : vector<32x256xf32>
    %95 = arith.addf %89, %94 : vector<32x256xf32>
    %96 = arith.truncf %95 : vector<32x256xf32> to vector<32x256xbf16>
    %c0_41 = arith.constant 0 : index
    %c256 = arith.constant 256 : index
    %97 = vector.load %arg4[%c0_41, %c256] : memref<32x512xbf16, #tpu.memory_space<vmem>>, vector<32x256xbf16>
    tpu.vector_store %arg4[%c0_41, %c256], %96 {strides = array<i32>} : memref<32x512xbf16, #tpu.memory_space<vmem>>, vector<32x256xbf16>,
    return
  }
  func.func @transform_0(%arg0: i32) -> (i32, i32, i32) {
    %c0_i32 = arith.constant 0 : i32
    %c0_i32_0 = arith.constant 0 : i32
    %c0_i32_1 = arith.constant 0 : i32
    %c0_i32_2 = arith.constant 0 : i32
    return %c0_i32, %c0_i32_0, %c0_i32_1 : i32, i32, i32
  }
  func.func @transform_1(%arg0: i32) -> (i32, i32, i32) {
    %c0_i32 = arith.constant 0 : i32
    %c0_i32_0 = arith.constant 0 : i32
    %c0_i32_1 = arith.constant 0 : i32
    %c0_i32_2 = arith.constant 0 : i32
    return %c0_i32, %c0_i32_0, %c0_i32_1 : i32, i32, i32
  }
  func.func @transform_2(%arg0: i32) -> (i32, i32) {
    %c0_i32 = arith.constant 0 : i32
    %c0_i32_0 = arith.constant 0 : i32
    %c0_i32_1 = arith.constant 0 : i32
    return %c0_i32, %c0_i32_0 : i32, i32
  }
  func.func @transform_3(%arg0: i32) -> (i32, i32) {
    %c0_i32 = arith.constant 0 : i32
    %c0_i32_0 = arith.constant 0 : i32
    %c0_i32_1 = arith.constant 0 : i32
    return %c0_i32, %c0_i32_0 : i32, i32
  }
}

</mosaic_0001>

<bundles_post_ra>
// kernel: sk_layer_pallas.1
= control target key start
LH: loop header
LB: loop body
LE: loop exit
PB: predicated region body
PF: predicated region fallthrough
CT: control target
= control target key end

     0   :  { %vm600_vm0 = vcmask 261120   ;;  %s4315_s0 = inlined_call_operand.vmem [shape: bf16[2,288,512], index: 0, kind: input, shape index: {}]   ;;  %s4316_s1 = inlined_call_operand.vmem [shape: bf16[2,32,288], index: 1, kind: input, shape index: {}]   ;;  %s4317_s2 = inlined_call_operand.vmem [shape: f32[104,32], index: 2, kind: input, shape index: {}]   ;;  %s4318_s3 = inlined_call_operand.vmem [shape: bf16[32,512], index: 3, kind: output, shape index: {}]  }
   0x1   :  { %v2129_v0 = vld [vmem:[%s4315_s0 + $0xe0] sm:$0xf]  ;;  %v2667_v1 = vld [vmem:[%s4315_s0 + $0xec] sm:$0xf0]  ;;  %v2665_v9 = vld [vmem:[%s4315_s0 + $0xe4] sm:$0xf] }
   0x2   :  { %v2257_v2 = vld [vmem:[%s4315_s0 + $0x1e0] sm:$0xf]  ;;  %v2130_v3 = vor.u32 %v2667_v1, %v2129_v0  ;;  %v2699_v4 = vld [vmem:[%s4315_s0 + $0x1ec] sm:$0xf0]  ;;  %v2131_v10 = vld [vmem:[%s4315_s0 + $0xf0] sm:$0xf0] }
   0x3   :  { %v2289_v5 = vld [vmem:[%s4315_s0 + $0x220] sm:$0xf]  ;;  %v2707_v6 = vld [vmem:[%s4315_s0 + $0x22c] sm:$0xf0]  ;;  %v2258_v7 = vor.u32 %v2699_v4, %v2257_v2  ;;  %v2134_v12 = vor.u32 %v2665_v9, %v2131_v10  ;;  %v2661_v20 = vld [vmem:[%s4315_s0 + $0xc4] sm:$0xf] }
   0x4   :  { %v2290_v8 = vor.u32 %v2707_v6, %v2289_v5  ;;  %v2113_v11 = vld [vmem:[%s4315_s0 + $0xc0] sm:$0xf]  ;;  %607 = vmatpush.bf16.msra.mxu0 %v2130_v3  ;;  %v2663_v13 = vld [vmem:[%s4315_s0 + $0xcc] sm:$0xf0]  ;;  %v2115_v22 = vld [vmem:[%s4315_s0 + $0xd0] sm:$0xf0] }
   0x5   :  { %v2241_v14 = vld [vmem:[%s4315_s0 + $0x1c0] sm:$0xf]  ;;  %v2695_v15 = vld [vmem:[%s4315_s0 + $0x1cc] sm:$0xf0]  ;;  %626 = vmatpush.bf16.msra.mxu1 %v2258_v7  ;;  %v2114_v16 = vor.u32 %v2663_v13, %v2113_v11  ;;  %664 = vmatpush.bf16.msra.mxu3 %v2134_v12  ;;  %v2001_v23 = vld [vmem:[%s4316_s1 + $0x8] sm:$0xf]  ;;  %v2118_v25 = vor.u32 %v2661_v20, %v2115_v22 }
   0x6   :  { %651 = vmatpush.bf16.msra.mxu2 %v2290_v8  ;;  %v2242_v17 = vor.u32 %v2695_v15, %v2241_v14  ;;  %v2273_v18 = vld [vmem:[%s4315_s0 + $0x200] sm:$0xf]  ;;  %v2703_v19 = vld [vmem:[%s4315_s0 + $0x20c] sm:$0xf0]  ;;  %v2633_v24 = vld [vmem:[%s4316_s1 + $0x10] sm:$0xf0] }
   0x7   :  { %v2274_v21 = vor.u32 %v2703_v19, %v2273_v18  ;;  %v2097_v26 = vld [vmem:[%s4315_s0 + $0xa0] sm:$0xf]  ;;  %v2659_v27 = vld [vmem:[%s4315_s0 + $0xac] sm:$0xf0]  ;;  %v2927_v29 = vor.u32 %v2633_v24, %v2001_v23  ;;  %v2657_v32 = vld [vmem:[%s4315_s0 + $0xa4] sm:$0xf] }
   0x8   :  { %v2225_v28 = vld [vmem:[%s4315_s0 + $0x1a0] sm:$0xf]  ;;  %608 = vmatpush.bf16.msra.mxu0 %v2114_v16  ;;  %v2098_v30 = vor.u32 %v2659_v27, %v2097_v26  ;;  %v2691_v31 = vld [vmem:[%s4315_s0 + $0x1ac] sm:$0xf0]  ;;  %v2099_v33 = vld [vmem:[%s4315_s0 + $0xb0] sm:$0xf0] }
   0x9   :  { %627 = vmatpush.bf16.msra.mxu1 %v2242_v17  ;;  %v2226_v34 = vor.u32 %v2691_v31, %v2225_v28  ;;  %v2697_v35 = vld [vmem:[%s4315_s0 + $0x1e4] sm:$0xf]  ;;  %v2259_v36 = vld [vmem:[%s4315_s0 + $0x1f0] sm:$0xf0]  ;;  %v2081_v37 = vld [vmem:[%s4315_s0 + $0x80] sm:$0xf]  ;;  %665 = vmatpush.bf16.msra.mxu3 %v2118_v25  ;;  %v2102_v38 = vor.u32 %v2657_v32, %v2099_v33 }
   0xa   :  { %652 = vmatpush.bf16.msra.mxu2 %v2274_v21  ;;  %v2262_v39 = vor.u32 %v2697_v35, %v2259_v36  ;;  %v2655_v40 = vld [vmem:[%s4315_s0 + $0x8c] sm:$0xf0]  ;;  %v2209_v41 = vld [vmem:[%s4315_s0 + $0x180] sm:$0xf]  ;;  %v2653_v43 = vld [vmem:[%s4315_s0 + $0x84] sm:$0xf] }
   0xb   :  { %v2687_v42 = vld [vmem:[%s4315_s0 + $0x18c] sm:$0xf0]  ;;  %v2083_v44 = vld [vmem:[%s4315_s0 + $0x90] sm:$0xf0]  ;;  %v2693_v45 = vld [vmem:[%s4315_s0 + $0x1c4] sm:$0xf]  ;;  %v2082_v46 = vor.u32 %v2655_v40, %v2081_v37 }
   0xc   :  { %609 = vmatpush.bf16.msra.mxu0 %v2098_v30  ;;  %v2243_v47 = vld [vmem:[%s4315_s0 + $0x1d0] sm:$0xf0]  ;;  %v2210_v48 = vor.u32 %v2687_v42, %v2209_v41  ;;  %v2065_v50 = vld [vmem:[%s4315_s0 + $0x60] sm:$0xf]  ;;  %v2651_v51 = vld [vmem:[%s4315_s0 + $0x6c] sm:$0xf0]  ;;  %v2086_v53 = vor.u32 %v2653_v43, %v2083_v44 }
   0xd   :  { %2303 = vmatmul.msk.bf16.vlgmr.msra.gmra.mxu2 %vm600_vm0, %v2927_v29  ;;  %628 = vmatpush.bf16.msra.mxu1 %v2226_v34  ;;  %v2246_v49 = vor.u32 %v2693_v45, %v2243_v47  ;;  %v2193_v52 = vld [vmem:[%s4315_s0 + $0x160] sm:$0xf]  ;;  %v2683_v54 = vld [vmem:[%s4315_s0 + $0x16c] sm:$0xf0]  ;;  %v2689_v55 = vld [vmem:[%s4315_s0 + $0x1a4] sm:$0xf]  ;;  %v2066_v59 = vor.u32 %v2651_v51, %v2065_v50 }
   0xe   :  { %683 = vmatpush.bf16.msrb.mxu2 %v2262_v39  ;;  %666 = vmatpush.bf16.msra.mxu3 %v2102_v38  ;;  %v2227_v56 = vld [vmem:[%s4315_s0 + $0x1b0] sm:$0xf0]  ;;  %v2649_v57 = vld [vmem:[%s4315_s0 + $0x64] sm:$0xf]  ;;  %v2194_v60 = vor.u32 %v2683_v54, %v2193_v52  ;;  %v2049_v62 = vld [vmem:[%s4315_s0 + $0x40] sm:$0xf] }
   0xf   :  { %v2067_v58 = vld [vmem:[%s4315_s0 + $0x70] sm:$0xf0]  ;;  %v2230_v61 = vor.u32 %v2689_v55, %v2227_v56  ;;  %v2647_v63 = vld [vmem:[%s4315_s0 + $0x4c] sm:$0xf0]  ;;  %v2177_v0 = vld [vmem:[%s4315_s0 + $0x140] sm:$0xf] }
  0x10   :  { %610 = vmatpush.bf16.msra.mxu0 %v2082_v46  ;;  %v2070_v1 = vor.u32 %v2649_v57, %v2067_v58  ;;  %v2679_v2 = vld [vmem:[%s4315_s0 + $0x14c] sm:$0xf0]  ;;  %v2685_v3 = vld [vmem:[%s4315_s0 + $0x184] sm:$0xf]  ;;  %v2211_v4 = vld [vmem:[%s4315_s0 + $0x190] sm:$0xf0]  ;;  %v2050_v7 = vor.u32 %v2647_v63, %v2049_v62 }
  0x11   :  { %629 = vmatpush.bf16.msra.mxu1 %v2210_v48  ;;  %v2645_v5 = vld [vmem:[%s4315_s0 + $0x44] sm:$0xf]  ;;  %v2051_v6 = vld [vmem:[%s4315_s0 + $0x50] sm:$0xf0]  ;;  %v2013_v8 = vld [vmem:[%s4316_s1 + $0x20] sm:$0xf]  ;;  %v2178_v10 = vor.u32 %v2679_v2, %v2177_v0  ;;  %v2214_v11 = vor.u32 %v2685_v3, %v2211_v4 }
  0x12   :  { %684 = vmatpush.bf16.msrb.mxu2 %v2246_v49  ;;  %667 = vmatpush.bf16.msra.mxu3 %v2086_v53  ;;  %v2636_v9 = vld [vmem:[%s4316_s1 + $0x28] sm:$0xf0]  ;;  %v2033_v12 = vld [vmem:[%s4315_s0 + $0x20] sm:$0xf]  ;;  %v2643_v13 = vld [vmem:[%s4315_s0 + $0x2c] sm:$0xf0]  ;;  %v2054_v15 = vor.u32 %v2645_v5, %v2051_v6 }
  0x13   :  { %v2161_v14 = vld [vmem:[%s4315_s0 + $0x120] sm:$0xf]  ;;  %v2675_v16 = vld [vmem:[%s4315_s0 + $0x12c] sm:$0xf0]  ;;  %v2681_v17 = vld [vmem:[%s4315_s0 + $0x164] sm:$0xf]  ;;  %v3048_v21 = vor.u32 %v2636_v9, %v2013_v8  ;;  %v2034_v22 = vor.u32 %v2643_v13, %v2033_v12 }
  0x14   :  { %611 = vmatpush.bf16.msra.mxu0 %v2066_v59  ;;  %v2195_v18 = vld [vmem:[%s4315_s0 + $0x170] sm:$0xf0]  ;;  %v2641_v19 = vld [vmem:[%s4315_s0 + $0x24] sm:$0xf]  ;;  %v2017_v23 = vld [vmem:[%s4315_s0] sm:$0xf]  ;;  %v2162_v26 = vor.u32 %v2675_v16, %v2161_v14 }
  0x15   :  { %630 = vmatpush.bf16.msra.mxu1 %v2194_v60  ;;  %v2035_v20 = vld [vmem:[%s4315_s0 + $0x30] sm:$0xf0]  ;;  %v2639_v24 = vld [vmem:[%s4315_s0 + $0xc] sm:$0xf0]  ;;  %v2145_v25 = vld [vmem:[%s4315_s0 + $0x100] sm:$0xf]  ;;  %v2198_v27 = vor.u32 %v2681_v17, %v2195_v18 }
  0x16   :  { %685 = vmatpush.bf16.msrb.mxu2 %v2230_v61  ;;  %668 = vmatpush.bf16.msra.mxu3 %v2070_v1  ;;  %v2671_v28 = vld [vmem:[%s4315_s0 + $0x10c] sm:$0xf0]  ;;  %v2637_v30 = vld [vmem:[%s4315_s0 + $0x4] sm:$0xf]  ;;  %v2019_v31 = vld [vmem:[%s4315_s0 + $0x10] sm:$0xf0]  ;;  %v2038_v32 = vor.u32 %v2641_v19, %v2035_v20  ;;  %v2018_v39 = vor.u32 %v2639_v24, %v2017_v23 }
  0x17   :  { %v2677_v33 = vld [vmem:[%s4315_s0 + $0x144] sm:$0xf]  ;;  %v2179_v34 = vld [vmem:[%s4315_s0 + $0x150] sm:$0xf0]  ;;  %v1993_v35 = vld [vmem:[%s4316_s1] sm:$0xf]  ;;  %v2146_v43 = vor.u32 %v2671_v28, %v2145_v25  ;;  %v2022_v48 = vor.u32 %v2637_v30, %v2019_v31 }
  0x18   :  { %612 = vmatpush.bf16.msra.mxu0 %v2050_v7  ;;  %v2632_v36 = vld [vmem:[%s4316_s1 + $0x8] sm:$0xf0]  ;;  %v2137_v37 = vld [vmem:[%s4315_s0 + $0xe8] sm:$0xf]  ;;  %v2668_v38 = vld [vmem:[%s4315_s0 + $0xf4] sm:$0xf0]  ;;  %v2182_v44 = vor.u32 %v2677_v33, %v2179_v34 }
  0x19   :  { %631 = vmatpush.bf16.msra.mxu1 %v2178_v10  ;;  %v2631_v40 = vld [vmem:[%s4316_s1 + $0x4] sm:$0xf]  ;;  %v2265_v41 = vld [vmem:[%s4315_s0 + $0x1e8] sm:$0xf]  ;;  %v2700_v42 = vld [vmem:[%s4315_s0 + $0x1f4] sm:$0xf0]  ;;  %v2138_v51 = vor.u32 %v2668_v38, %v2137_v37  ;;  %v3112_v52 = vor.u32 %v2632_v36, %v1993_v35 }
  0x1a   :  { %686 = vmatpush.bf16.msrb.mxu2 %v2214_v11  ;;  %669 = vmatpush.bf16.msra.mxu3 %v2054_v15  ;;  %v1995_v45 = vld [vmem:[%s4316_s1 + $0xc] sm:$0xf0]  ;;  %v2705_v46 = vld [vmem:[%s4315_s0 + $0x224] sm:$0xf]  ;;  %v2291_v47 = vld [vmem:[%s4315_s0 + $0x230] sm:$0xf0]  ;;  %v2266_v53 = vor.u32 %v2700_v42, %v2265_v41 }
  0x1b   :  { %v2673_v49 = vld [vmem:[%s4315_s0 + $0x124] sm:$0xf]  ;;  %v2163_v50 = vld [vmem:[%s4315_s0 + $0x130] sm:$0xf0]  ;;  %v2121_v54 = vld [vmem:[%s4315_s0 + $0xc8] sm:$0xf]  ;;  %v3120_v56 = vor.u32 %v2631_v40, %v1995_v45  ;;  %v2294_v57 = vor.u32 %v2705_v46, %v2291_v47 }
  0x1c   :  { %613 = vmatpush.bf16.msra.mxu0 %v2034_v22  ;;  %v2664_v55 = vld [vmem:[%s4315_s0 + $0xd4] sm:$0xf0]  ;;  %v2249_v58 = vld [vmem:[%s4315_s0 + $0x1c8] sm:$0xf]  ;;  %v2841_v60 = vmov 0   ;;  %v2166_v61 = vor.u32 %v2673_v49, %v2163_v50  ;;  %v3144_v4 = vld [vmem:[%s4317_s2 + $0x40] sm:$0xff] }
  0x1d   :  { %2304 = vmatmul.msk.bf16.gmra.mxu2 %vm600_vm0, %v3048_v21  ;;  %632 = vmatpush.bf16.msra.mxu1 %v2162_v26  ;;  %v2696_v59 = vld [vmem:[%s4315_s0 + $0x1d4] sm:$0xf0]  ;;  %v2669_v62 = vld [vmem:[%s4315_s0 + $0x104] sm:$0xf]  ;;  %v2147_v63 = vld [vmem:[%s4315_s0 + $0x110] sm:$0xf0]  ;;  %v2122_v0 = vor.u32 %v2664_v55, %v2121_v54 }
  0x1e   :  { %687 = vmatpush.bf16.msrb.mxu2 %v2198_v27  ;;  %670 = vmatpush.bf16.msra.mxu3 %v2038_v32  ;;  %v2105_v1 = vld [vmem:[%s4315_s0 + $0xa8] sm:$0xf]  ;;  %v2660_v2 = vld [vmem:[%s4315_s0 + $0xb4] sm:$0xf0]  ;;  %v2250_v3 = vor.u32 %v2696_v59, %v2249_v58  ;;  %v2701_v5 = vld [vmem:[%s4315_s0 + $0x204] sm:$0xf]  ;;  %v2150_v10 = vor.u32 %v2669_v62, %v2147_v63 }
  0x1f   :  { %2798 = vset.pattern.permute.xlu0 %v2841_v60  ;;  %v2275_v6 = vld [vmem:[%s4315_s0 + $0x210] sm:$0xf0]  ;;  %v2233_v7 = vld [vmem:[%s4315_s0 + $0x1a8] sm:$0xf]  ;;  %v2692_v8 = vld [vmem:[%s4315_s0 + $0x1b4] sm:$0xf0]  ;;  %v2106_v13 = vor.u32 %v2660_v2, %v2105_v1  ;;  %2800 = vset.pattern.permute.xlu2 %v2841_v60 }
  0x20   :  { %614 = vmatpush.bf16.msra.mxu0 %v2018_v39  ;;  %v2278_v9 = vor.u32 %v2701_v5, %v2275_v6  ;;  %v2297_v11 = vld [vmem:[%s4315_s0 + $0x228] sm:$0xf]  ;;  %v2708_v12 = vld [vmem:[%s4315_s0 + $0x234] sm:$0xf0]  ;;  %192 = vperm.xlu0 %2798, %v3144_v4   ;;  %v2234_v15 = vor.u32 %v2692_v8, %v2233_v7  ;;  %v2666_v20 = vld [vmem:[%s4315_s0 + $0xec] sm:$0xf] }
  0x21   :  { %633 = vmatpush.bf16.msra.mxu1 %v2146_v43  ;;  %v2298_v14 = vor.u32 %v2708_v12, %v2297_v11  ;;  %v2089_v16 = vld [vmem:[%s4315_s0 + $0x88] sm:$0xf]  ;;  %v2656_v17 = vld [vmem:[%s4315_s0 + $0x94] sm:$0xf0]  ;;  %v2635_v24 = vld [vmem:[%s4316_s1 + $0x20] sm:$0xf0] }
  0x22   :  { %688 = vmatpush.bf16.msrb.mxu2 %v2182_v44  ;;  %671 = vmatpush.bf16.msra.mxu3 %v2022_v48  ;;  %v2217_v18 = vld [vmem:[%s4315_s0 + $0x188] sm:$0xf]  ;;  %v2688_v19 = vld [vmem:[%s4315_s0 + $0x194] sm:$0xf0]  ;;  %v2090_v22 = vor.u32 %v2656_v17, %v2089_v16  ;;  %v2139_v28 = vld [vmem:[%s4315_s0 + $0xf8] sm:$0xf0] }
  0x23   :  { %615 = vmatmul.bf16.vlgmr.msra.gmra.mxu0 %v3112_v52  ;;  %v2005_v23 = vld [vmem:[%s4316_s1 + $0x18] sm:$0xf]  ;;  %v2201_v25 = vld [vmem:[%s4315_s0 + $0x168] sm:$0xf]  ;;  %v2218_v30 = vor.u32 %v2688_v19, %v2217_v18  ;;  %v2142_v32 = vor.u32 %v2666_v20, %v2139_v28  ;;  %v2662_v37 = vld [vmem:[%s4315_s0 + $0xcc] sm:$0xf] }
  0x24   :  { %634 = vmatmul.bf16.vlgmr.msra.gmra.mxu1 %v3120_v56  ;;  %708 = vmatpush.bf16.msrb.mxu0 %v2294_v57  ;;  %v2073_v26 = vld [vmem:[%s4315_s0 + $0x68] sm:$0xf]  ;;  %v2652_v27 = vld [vmem:[%s4315_s0 + $0x74] sm:$0xf0]  ;;  %v2123_v38 = vld [vmem:[%s4315_s0 + $0xd8] sm:$0xf0]  ;;  %v3237_v46 = vor.u32 %v2635_v24, %v2005_v23 }
  0x25   :  { %721 = vmatpush.bf16.msrb.mxu1 %v2138_v51  ;;  %672 = vmatmul.bf16.vlgmr.msra.gmra.mxu3 %v3112_v52  ;;  %v3203_v31 = vld [vmem:[%s4317_s2 + $0x48] sm:$0xff]  ;;  %v2704_v34 = vld [vmem:[%s4315_s0 + $0x214] sm:$0xf0]  ;;  %v2634_v39 = vld [vmem:[%s4316_s1 + $0x1c] sm:$0xf]  ;;  %v2126_v41 = vor.u32 %v2662_v37, %v2123_v38  ;;  %v2074_v42 = vor.u32 %v2652_v27, %v2073_v26 }
  0x26   :  { %740 = vmatpush.bf16.msrb.mxu3 %v2266_v53  ;;  %689 = vmatpush.bf16.msrb.mxu2 %v2166_v61  ;;  %v2281_v33 = vld [vmem:[%s4315_s0 + $0x208] sm:$0xf]  ;;  %v2684_v35 = vld [vmem:[%s4315_s0 + $0x174] sm:$0xf0]  ;;  %v2658_v43 = vld [vmem:[%s4315_s0 + $0xac] sm:$0xf] }
  0x27   :  { %v2282_v36 = vor.u32 %v2704_v34, %v2281_v33  ;;  %v2007_v40 = vld [vmem:[%s4316_s1 + $0x24] sm:$0xf0]  ;;  %v2107_v44 = vld [vmem:[%s4315_s0 + $0xb8] sm:$0xf0]  ;;  %v2449_v45 = vld [vmem:[%s4315_s0 + $0x320] sm:$0xf]  ;;  %v2202_v47 = vor.u32 %v2684_v35, %v2201_v25 }
  0x28   :  { %709 = vmatpush.bf16.msrb.mxu0 %v2278_v9  ;;  %197 = vperm.xlu0 %2798, %v3203_v31   ;;  %v2057_v48 = vld [vmem:[%s4315_s0 + $0x48] sm:$0xf]  ;;  %v2648_v49 = vld [vmem:[%s4315_s0 + $0x54] sm:$0xf0]  ;;  %v2745_v50 = vld [vmem:[%s4315_s0 + $0x32c] sm:$0xf0]  ;;  %v3248_v51 = vor.u32 %v2634_v39, %v2007_v40  ;;  %v2110_v58 = vor.u32 %v2658_v43, %v2107_v44 }
  0x29   :  { %722 = vmatpush.bf16.msrb.mxu1 %v2122_v0  ;;  %v2185_v53 = vld [vmem:[%s4315_s0 + $0x148] sm:$0xf]  ;;  %v2680_v54 = vld [vmem:[%s4315_s0 + $0x154] sm:$0xf0]  ;;  %v2450_v55 = vor.u32 %v2745_v50, %v2449_v45  ;;  %v2433_v57 = vld [vmem:[%s4315_s0 + $0x300] sm:$0xf]  ;;  %v2058_v60 = vor.u32 %v2648_v49, %v2057_v48 }
  0x2a   :  { %741 = vmatpush.bf16.msrb.mxu3 %v2250_v3  ;;  %690 = vmatpush.bf16.msrb.mxu2 %v2150_v10  ;;  %v2741_v59 = vld [vmem:[%s4315_s0 + $0x30c] sm:$0xf0]  ;;  %v2169_v61 = vld [vmem:[%s4315_s0 + $0x128] sm:$0xf]  ;;  %v2654_v62 = vld [vmem:[%s4315_s0 + $0x8c] sm:$0xf]  ;;  %v2186_v0 = vor.u32 %v2680_v54, %v2185_v53 }
  0x2b   :  { %v2091_v63 = vld [vmem:[%s4315_s0 + $0x98] sm:$0xf0]  ;;  %v2041_v1 = vld [vmem:[%s4315_s0 + $0x28] sm:$0xf]  ;;  %v2644_v2 = vld [vmem:[%s4315_s0 + $0x34] sm:$0xf0]  ;;  %v2434_v5 = vor.u32 %v2741_v59, %v2433_v57 }
  0x2c   :  { %778 = vmatpush.bf16.msra.mxu0 %v2142_v32  ;;  %v3281_v3 = vld [vmem:[%s4317_s2 + $0x58] sm:$0xff]  ;;  %v2417_v7 = vld [vmem:[%s4315_s0 + $0x2e0] sm:$0xf]  ;;  %v2737_v8 = vld [vmem:[%s4315_s0 + $0x2ec] sm:$0xf0]  ;;  %v2094_v9 = vor.u32 %v2654_v62, %v2091_v63  ;;  %v2042_v11 = vor.u32 %v2644_v2, %v2041_v1 }
  0x2d   :  { %723 = vmatpush.bf16.msrb.mxu1 %v2106_v13  ;;  %691 = vmatmul.bf16.vlgmr.msrb.gmra.mxu2 %v3120_v56  ;;  %v2676_v6 = vld [vmem:[%s4315_s0 + $0x134] sm:$0xf0]  ;;  %v3297_v10 = vld [vmem:[%s4317_s2 + $0x50] sm:$0xff]  ;;  %v2153_v12 = vld [vmem:[%s4315_s0 + $0x108] sm:$0xf]  ;;  %v2418_v19 = vor.u32 %v2737_v8, %v2417_v7 }
  0x2e   :  { %765 = vmatpush.bf16.msra.mxu2 %v2298_v14  ;;  %742 = vmatpush.bf16.msrb.mxu3 %v2234_v15  ;;  %v2650_v13 = vld [vmem:[%s4315_s0 + $0x6c] sm:$0xf]  ;;  %v2075_v14 = vld [vmem:[%s4315_s0 + $0x78] sm:$0xf0]  ;;  %v2170_v15 = vor.u32 %v2676_v6, %v2169_v61  ;;  %v2672_v16 = vld [vmem:[%s4315_s0 + $0x114] sm:$0xf0] }
  0x2f   :  { %v2025_v17 = vld [vmem:[%s4315_s0 + $0x8] sm:$0xf]  ;;  %v2640_v18 = vld [vmem:[%s4315_s0 + $0x14] sm:$0xf0]  ;;  %v2706_v20 = vld [vmem:[%s4315_s0 + $0x22c] sm:$0xf]  ;;  %202 = vperm.xlu2 %2800, %v3297_v10   ;;  %v2078_v25 = vor.u32 %v2650_v13, %v2075_v14  ;;  %v2154_v33 = vor.u32 %v2672_v16, %v2153_v12 }
  0x30   :  { %779 = vmatpush.bf16.msra.mxu0 %v2126_v41  ;;  %207 = vperm.xlu0 %2798, %v3281_v3   ;;  %v2267_v23 = vld [vmem:[%s4315_s0 + $0x1f8] sm:$0xf0]  ;;  %v2401_v26 = vld [vmem:[%s4315_s0 + $0x2c0] sm:$0xf]  ;;  %v2733_v27 = vld [vmem:[%s4315_s0 + $0x2cc] sm:$0xf0]  ;;  %v2026_v28 = vor.u32 %v2640_v18, %v2025_v17 }
  0x31   :  { %724 = vmatpush.bf16.msrb.mxu1 %v2090_v22  ;;  %v2698_v22 = vld [vmem:[%s4315_s0 + $0x1ec] sm:$0xf]  ;;  %v2299_v24 = vld [vmem:[%s4315_s0 + $0x238] sm:$0xf0]  ;;  %v2402_v38 = vor.u32 %v2733_v27, %v2401_v26  ;;  %v2385_v45 = vld [vmem:[%s4315_s0 + $0x2a0] sm:$0xf] }
  0x32   :  { %743 = vmatpush.bf16.msrb.mxu3 %v2218_v30  ;;  %766 = vmatpush.bf16.msra.mxu2 %v2282_v36  ;;  %v2646_v30 = vld [vmem:[%s4315_s0 + $0x4c] sm:$0xf]  ;;  %v2059_v32 = vld [vmem:[%s4315_s0 + $0x58] sm:$0xf0]  ;;  %v2270_v34 = vor.u32 %v2698_v22, %v2267_v23  ;;  %v2302_v35 = vor.u32 %v2706_v20, %v2299_v24  ;;  %v2369_v59 = vld [vmem:[%s4315_s0 + $0x280] sm:$0xf] }
  0x33   :  { %620 = vmatmul.bf16.gmra.mxu0 %v3237_v46  ;;  %v2694_v36 = vld [vmem:[%s4315_s0 + $0x1cc] sm:$0xf]  ;;  %v2251_v37 = vld [vmem:[%s4315_s0 + $0x1d8] sm:$0xf0]  ;;  %v2062_v41 = vor.u32 %v2646_v30, %v2059_v32  ;;  %v2725_v61 = vld [vmem:[%s4315_s0 + $0x28c] sm:$0xf0] }
  0x34   :  { %639 = vmatmul.bf16.gmra.mxu1 %v3248_v51  ;;  %780 = vmatpush.bf16.msra.mxu0 %v2110_v58  ;;  %v2702_v39 = vld [vmem:[%s4315_s0 + $0x20c] sm:$0xf]  ;;  %v2283_v40 = vld [vmem:[%s4315_s0 + $0x218] sm:$0xf0]  ;;  %v2254_v44 = vor.u32 %v2694_v36, %v2251_v37  ;;  %v2743_v62 = vld [vmem:[%s4315_s0 + $0x324] sm:$0xf]  ;;  %v2370_v8 = vor.u32 %v2725_v61, %v2369_v59 }
  0x35   :  { %725 = vmatpush.bf16.msrb.mxu1 %v2074_v42  ;;  %677 = vmatmul.bf16.gmra.mxu3 %v3237_v46  ;;  %v2642_v42 = vld [vmem:[%s4315_s0 + $0x2c] sm:$0xf]  ;;  %v2043_v43 = vld [vmem:[%s4315_s0 + $0x38] sm:$0xf0]  ;;  %v2286_v50 = vor.u32 %v2702_v39, %v2283_v40  ;;  %v2451_v63 = vld [vmem:[%s4315_s0 + $0x330] sm:$0xf0] }
  0x36   :  { %1263 = vmatpush.bf16.msrb.mxu2 %v2450_v55  ;;  %744 = vmatpush.bf16.msrb.mxu3 %v2202_v47  ;;  %v2729_v47 = vld [vmem:[%s4315_s0 + $0x2ac] sm:$0xf0]  ;;  %v2690_v48 = vld [vmem:[%s4315_s0 + $0x1ac] sm:$0xf]  ;;  %v2235_v49 = vld [vmem:[%s4315_s0 + $0x1b8] sm:$0xf0]  ;;  %v2046_v53 = vor.u32 %v2642_v42, %v2043_v43  ;;  %v2454_v1 = vor.u32 %v2743_v62, %v2451_v63 }
  0x37   :  { %v2686_v54 = vld [vmem:[%s4315_s0 + $0x18c] sm:$0xf]  ;;  %v2386_v55 = vor.u32 %v2729_v47, %v2385_v45  ;;  %v2027_v58 = vld [vmem:[%s4315_s0 + $0x18] sm:$0xf0]  ;;  %v2577_v2 = vld [vmem:[%s4315_s0 + $0x420] sm:$0xf] }
  0x38   :  { %781 = vmatpush.bf16.msra.mxu0 %v2094_v9  ;;  %v2638_v57 = vld [vmem:[%s4315_s0 + $0xc] sm:$0xf]  ;;  %v2739_v7 = vld [vmem:[%s4315_s0 + $0x304] sm:$0xf]  ;;  %v2353_v9 = vld [vmem:[%s4315_s0 + $0x260] sm:$0xf] }
  0x39   :  { %726 = vmatpush.bf16.msrb.mxu1 %v2058_v60  ;;  %v2238_v60 = vor.u32 %v2690_v48, %v2235_v49  ;;  %v2030_v6 = vor.u32 %v2638_v57, %v2027_v58  ;;  %v2435_v12 = vld [vmem:[%s4315_s0 + $0x310] sm:$0xf0]  ;;  %v2721_v14 = vld [vmem:[%s4315_s0 + $0x26c] sm:$0xf0]  ;;  %v2561_v16 = vld [vmem:[%s4315_s0 + $0x400] sm:$0xf] }
  0x3a   :  { %745 = vmatpush.bf16.msrb.mxu3 %v2186_v0  ;;  %1264 = vmatpush.bf16.msrb.mxu2 %v2434_v5  ;;  %v2219_v0 = vld [vmem:[%s4315_s0 + $0x198] sm:$0xf0]  ;;  %v2777_v5 = vld [vmem:[%s4315_s0 + $0x42c] sm:$0xf0]  ;;  %v2682_v18 = vld [vmem:[%s4315_s0 + $0x16c] sm:$0xf]  ;;  %v2354_v20 = vor.u32 %v2721_v14, %v2353_v9 }
  0x3b   :  { %v2222_v13 = vor.u32 %v2686_v54, %v2219_v0  ;;  %v2773_v17 = vld [vmem:[%s4315_s0 + $0x40c] sm:$0xf0]  ;;  %v2337_v22 = vld [vmem:[%s4315_s0 + $0x240] sm:$0xf]  ;;  %v2735_v26 = vld [vmem:[%s4315_s0 + $0x2e4] sm:$0xf] }
  0x3c   :  { %782 = vmatpush.bf16.msra.mxu0 %v2078_v25  ;;  %v2717_v23 = vld [vmem:[%s4315_s0 + $0x24c] sm:$0xf0]  ;;  %v2562_v24 = vor.u32 %v2773_v17, %v2561_v16  ;;  %v2419_v27 = vld [vmem:[%s4315_s0 + $0x2f0] sm:$0xf0]  ;;  %v2678_v30 = vld [vmem:[%s4315_s0 + $0x14c] sm:$0xf] }
  0x3d   :  { %727 = vmatpush.bf16.msrb.mxu1 %v2042_v11  ;;  %696 = vmatmul.bf16.gmra.mxu2 %v3248_v51  ;;  %v2578_v11 = vor.u32 %v2777_v5, %v2577_v2  ;;  %v2187_v32 = vld [vmem:[%s4315_s0 + $0x158] sm:$0xf0]  ;;  %v2579_v36 = vld [vmem:[%s4315_s0 + $0x430] sm:$0xf0]  ;;  %v2338_v37 = vor.u32 %v2717_v23, %v2337_v22  ;;  %v2731_v39 = vld [vmem:[%s4315_s0 + $0x2c4] sm:$0xf] }
  0x3e   :  { %746 = vmatpush.bf16.msrb.mxu3 %v2170_v15  ;;  %1265 = vmatpush.bf16.msrb.mxu2 %v2418_v19  ;;  %v2438_v15 = vor.u32 %v2739_v7, %v2435_v12  ;;  %v2203_v19 = vld [vmem:[%s4315_s0 + $0x178] sm:$0xf0]  ;;  %v2190_v40 = vor.u32 %v2678_v30, %v2187_v32  ;;  %v2529_v42 = vld [vmem:[%s4315_s0 + $0x3c0] sm:$0xf]  ;;  %v2765_v43 = vld [vmem:[%s4315_s0 + $0x3cc] sm:$0xf0] }
  0x3f   :  { %v2206_v25 = vor.u32 %v2682_v18, %v2203_v19  ;;  %v2171_v45 = vld [vmem:[%s4315_s0 + $0x138] sm:$0xf0]  ;;  %v2771_v48 = vld [vmem:[%s4315_s0 + $0x404] sm:$0xf]  ;;  %v2563_v49 = vld [vmem:[%s4315_s0 + $0x410] sm:$0xf0] }
  0x40   :  { %783 = vmatpush.bf16.msra.mxu0 %v2062_v41  ;;  %v2403_v41 = vld [vmem:[%s4315_s0 + $0x2d0] sm:$0xf0]  ;;  %v2513_v58 = vld [vmem:[%s4315_s0 + $0x3a0] sm:$0xf]  ;;  %v2670_v59 = vld [vmem:[%s4315_s0 + $0x10c] sm:$0xf]  ;;  %v2566_v61 = vor.u32 %v2771_v48, %v2563_v49 }
  0x41   :  { %728 = vmatpush.bf16.msrb.mxu1 %v2026_v28  ;;  %v2545_v28 = vld [vmem:[%s4315_s0 + $0x3e0] sm:$0xf]  ;;  %v2387_v57 = vld [vmem:[%s4315_s0 + $0x2b0] sm:$0xf0]  ;;  %v2761_v62 = vld [vmem:[%s4315_s0 + $0x3ac] sm:$0xf0] }
  0x42   :  { %747 = vmatpush.bf16.msrb.mxu3 %v2154_v33  ;;  %1266 = vmatpush.bf16.msrb.mxu2 %v2402_v38  ;;  %v2422_v33 = vor.u32 %v2735_v26, %v2419_v27  ;;  %v2609_v63 = vld [vmem:[%s4315_s0 + $0x460] sm:$0xf]  ;;  %v2785_v0 = vld [vmem:[%s4315_s0 + $0x46c] sm:$0xf0]  ;;  %v2514_v2 = vor.u32 %v2761_v62, %v2513_v58  ;;  %v2767_v5 = vld [vmem:[%s4315_s0 + $0x3e4] sm:$0xf] }
  0x43   :  { %2305 = vmatmul.msk.bf16.vlgmr.msrb.gmra.mxu0 %vm600_vm0, %v2927_v29  ;;  %v2723_v7 = vld [vmem:[%s4315_s0 + $0x284] sm:$0xf]  ;;  %v2371_v9 = vld [vmem:[%s4315_s0 + $0x290] sm:$0xf0]  ;;  %v2757_v12 = vld [vmem:[%s4315_s0 + $0x38c] sm:$0xf0] }
  0x44   :  { %729 = vmatmul.bf16.vlgmr.msrb.gmra.mxu1 %v3112_v52  ;;  %784 = vmatpush.bf16.msra.mxu0 %v2046_v53  ;;  %v2530_v53 = vor.u32 %v2765_v43, %v2529_v42  ;;  %v2781_v16 = vld [vmem:[%s4315_s0 + $0x44c] sm:$0xf0]  ;;  %v2374_v17 = vor.u32 %v2723_v7, %v2371_v9  ;;  %v2763_v19 = vld [vmem:[%s4315_s0 + $0x3c4] sm:$0xf]  ;;  %v2355_v23 = vld [vmem:[%s4315_s0 + $0x270] sm:$0xf0] }
  0x45   :  { %797 = vmatpush.bf16.msra.mxu1 %v2270_v34  ;;  %748 = vmatmul.bf16.vlgmr.msrb.gmra.mxu3 %v3120_v56  ;;  %v2769_v34 = vld [vmem:[%s4315_s0 + $0x3ec] sm:$0xf0]  ;;  %v2719_v22 = vld [vmem:[%s4315_s0 + $0x264] sm:$0xf]  ;;  %v2499_v43 = vld [vmem:[%s4315_s0 + $0x390] sm:$0xf0] }
  0x46   :  { %822 = vmatpush.bf16.msra.mxu3 %v2302_v35  ;;  %1267 = vmatpush.bf16.msrb.mxu2 %v2386_v55  ;;  %v2775_v35 = vld [vmem:[%s4315_s0 + $0x424] sm:$0xf]  ;;  %v2546_v38 = vor.u32 %v2769_v34, %v2545_v28  ;;  %v2753_v26 = vld [vmem:[%s4315_s0 + $0x36c] sm:$0xf0]  ;;  %v2358_v28 = vor.u32 %v2719_v22, %v2355_v23  ;;  %v2746_v48 = vld [vmem:[%s4315_s0 + $0x334] sm:$0xf0] }
  0x47   :  { %v2582_v47 = vor.u32 %v2775_v35, %v2579_v36  ;;  %v2727_v55 = vld [vmem:[%s4315_s0 + $0x2a4] sm:$0xf]  ;;  %v2842_v35 = vmov 1   ;;  %v2339_v36 = vld [vmem:[%s4315_s0 + $0x250] sm:$0xf0] }
  0x48   :  { %785 = vmatpush.bf16.msra.mxu0 %v2030_v6  ;;  %v2547_v6 = vld [vmem:[%s4315_s0 + $0x3f0] sm:$0xf0]  ;;  %v2759_v32 = vld [vmem:[%s4315_s0 + $0x3a4] sm:$0xf]  ;;  %2799 = vset.pattern.permute.xlu1 %v2842_v35  ;;  %v2774_v58 = vld [vmem:[%s4315_s0 + $0x414] sm:$0xf0] }
  0x49   :  { %798 = vmatpush.bf16.msra.mxu1 %v2254_v44  ;;  %v2674_v44 = vld [vmem:[%s4315_s0 + $0x12c] sm:$0xf]  ;;  %v2550_v14 = vor.u32 %v2767_v5, %v2547_v6  ;;  %v2715_v34 = vld [vmem:[%s4315_s0 + $0x244] sm:$0xf]  ;;  %2801 = vset.pattern.permute.xlu2 %v2842_v35  ;;  %v2553_v5 = vld [vmem:[%s4315_s0 + $0x3e8] sm:$0xf] }
  0x4a   :  { %823 = vmatpush.bf16.msra.mxu3 %v2286_v50  ;;  %1268 = vmatpush.bf16.msrb.mxu2 %v2370_v8  ;;  %v2406_v50 = vor.u32 %v2731_v39, %v2403_v41  ;;  %v2174_v54 = vor.u32 %v2674_v44, %v2171_v45  ;;  %v2755_v42 = vld [vmem:[%s4315_s0 + $0x384] sm:$0xf]  ;;  %v2778_v44 = vld [vmem:[%s4315_s0 + $0x434] sm:$0xf0]  ;;  %v2710_v45 = vld [vmem:[%s4316_s1 + $0x38] sm:$0xf0] }
  0x4b   :  { %852 = vperm.xlu1 %2799, %v3144_v4   ;;  %860 = vperm.xlu2 %2801, %v3297_v10   ;;  %v2313_v4 = vld [vmem:[%s4316_s1 + $0x30] sm:$0xf]  ;;  %v2585_v10 = vld [vmem:[%s4315_s0 + $0x428] sm:$0xf]  ;;  %v2502_v49 = vor.u32 %v2755_v42, %v2499_v43  ;;  %v2730_v22 = vld [vmem:[%s4315_s0 + $0x2b4] sm:$0xf0] }
  0x4c   :  { %1282 = vmatpush.bf16.msrb.mxu0 %v2578_v11  ;;  %v2497_v11 = vld [vmem:[%s4315_s0 + $0x380] sm:$0xf]  ;;  %v3632_v62 = vor.u32 %v2710_v45, %v2313_v4  ;;  %v2425_v6 = vld [vmem:[%s4315_s0 + $0x2e8] sm:$0xf]  ;;  %v2713_v23 = vld [vmem:[%s4316_s1 + $0x50] sm:$0xf0] }
  0x4d   :  { %799 = vmatpush.bf16.msra.mxu1 %v2238_v60  ;;  %2307 = vmatmul.msk.bf16.vlgmr.msra.gmra.mxu2 %vm600_vm0, %v2927_v29  ;;  %v2155_v60 = vld [vmem:[%s4315_s0 + $0x118] sm:$0xf0]  ;;  %v2498_v18 = vor.u32 %v2757_v12, %v2497_v11  ;;  %v2537_v12 = vld [vmem:[%s4315_s0 + $0x3c8] sm:$0xf]  ;;  %v2726_v35 = vld [vmem:[%s4315_s0 + $0x294] sm:$0xf0] }
  0x4e   :  { %1320 = vmatpush.bf16.msrb.mxu3 %v2454_v1  ;;  %1269 = vmatpush.bf16.msrb.mxu2 %v2354_v20  ;;  %v2390_v1 = vor.u32 %v2727_v55, %v2387_v57  ;;  %v2158_v8 = vor.u32 %v2670_v59, %v2155_v60  ;;  %v2531_v20 = vld [vmem:[%s4315_s0 + $0x3d0] sm:$0xf0]  ;;  %v2441_v60 = vld [vmem:[%s4315_s0 + $0x308] sm:$0xf]  ;;  %v2315_v42 = vld [vmem:[%s4316_s1 + $0x3c] sm:$0xf0] }
  0x4f   :  { %v2534_v27 = vor.u32 %v2763_v19, %v2531_v20  ;;  %v2483_v55 = vld [vmem:[%s4315_s0 + $0x370] sm:$0xf0]  ;;  %v2762_v19 = vld [vmem:[%s4315_s0 + $0x3b4] sm:$0xf0]  ;;  %v2393_v20 = vld [vmem:[%s4315_s0 + $0x2a8] sm:$0xf] }
  0x50   :  { %1283 = vmatpush.bf16.msrb.mxu0 %v2562_v24  ;;  %v2481_v24 = vld [vmem:[%s4315_s0 + $0x360] sm:$0xf]  ;;  %v2722_v4 = vld [vmem:[%s4315_s0 + $0x274] sm:$0xf0] }
  0x51   :  { %800 = vmatpush.bf16.msra.mxu1 %v2222_v13  ;;  %v2610_v13 = vor.u32 %v2785_v0, %v2609_v63  ;;  %v2482_v30 = vor.u32 %v2753_v26, %v2481_v24  ;;  %v2394_v24 = vor.u32 %v2730_v22, %v2393_v20  ;;  %v2714_v20 = vld [vmem:[%s4316_s1 + $0x58] sm:$0xf0] }
  0x52   :  { %1321 = vmatpush.bf16.msrb.mxu3 %v2438_v15  ;;  %1270 = vmatpush.bf16.msrb.mxu2 %v2338_v37  ;;  %v2593_v15 = vld [vmem:[%s4315_s0 + $0x440] sm:$0xf] }
  0x53   :  { %2306 = vmatmul.msk.bf16.gmra.mxu0 %vm600_vm0, %v3048_v21  ;;  %v2465_v37 = vld [vmem:[%s4315_s0 + $0x340] sm:$0xf]  ;;  %856 = vperm.xlu1 %2799, %v3203_v31   ;;  %v2770_v31 = vld [vmem:[%s4315_s0 + $0x3f4] sm:$0xf0] }
  0x54   :  { %1284 = vmatpush.bf16.msrb.mxu0 %v2546_v38  ;;  %734 = vmatmul.bf16.gmra.mxu1 %v3237_v46  ;;  %v2749_v38 = vld [vmem:[%s4315_s0 + $0x34c] sm:$0xf0]  ;;  %v2554_v7 = vor.u32 %v2770_v31, %v2553_v5  ;;  %v2740_v5 = vld [vmem:[%s4315_s0 + $0x30c] sm:$0xf]  ;;  %v2443_v31 = vld [vmem:[%s4315_s0 + $0x318] sm:$0xf0] }
  0x55   :  { %801 = vmatpush.bf16.msra.mxu1 %v2206_v25  ;;  %753 = vmatmul.bf16.gmra.mxu3 %v3248_v51  ;;  %v2594_v25 = vor.u32 %v2781_v16, %v2593_v15  ;;  %v2466_v41 = vor.u32 %v2749_v38, %v2465_v37  ;;  %v2734_v16 = vld [vmem:[%s4315_s0 + $0x2d4] sm:$0xf0]  ;;  %v2489_v38 = vld [vmem:[%s4315_s0 + $0x368] sm:$0xf] }
  0x56   :  { %1322 = vmatpush.bf16.msrb.mxu3 %v2422_v33  ;;  %1339 = vmatpush.bf16.msra.mxu2 %v2582_v47  ;;  %v2515_v33 = vld [vmem:[%s4315_s0 + $0x3b0] sm:$0xf0]  ;;  %v2586_v47 = vor.u32 %v2778_v44, %v2585_v10  ;;  %v2321_v10 = vld [vmem:[%s4316_s1 + $0x38] sm:$0xf]  ;;  %v2711_v44 = vld [vmem:[%s4316_s1 + $0x40] sm:$0xf0] }
  0x57   :  { %v2518_v39 = vor.u32 %v2759_v32, %v2515_v33  ;;  %v2786_v33 = vld [vmem:[%s4315_s0 + $0x474] sm:$0xf0] }
  0x58   :  { %1285 = vmatpush.bf16.msrb.mxu0 %v2530_v53  ;;  %v2611_v53 = vld [vmem:[%s4315_s0 + $0x470] sm:$0xf0] }
  0x59   :  { %802 = vmatpush.bf16.msra.mxu1 %v2190_v40  ;;  %v2342_v40 = vor.u32 %v2715_v34, %v2339_v36  ;;  %v2377_v34 = vld [vmem:[%s4315_s0 + $0x288] sm:$0xf] }
  0x5a   :  { %1323 = vmatpush.bf16.msrb.mxu3 %v2406_v50  ;;  %1340 = vmatpush.bf16.msra.mxu2 %v2566_v61  ;;  %v2742_v61 = vld [vmem:[%s4315_s0 + $0x314] sm:$0xf0]  ;;  %v2378_v37 = vor.u32 %v2726_v35, %v2377_v34  ;;  %v2523_v35 = vld [vmem:[%s4315_s0 + $0x3b8] sm:$0xf0] }
  0x5b   :  { %v2442_v63 = vor.u32 %v2742_v61, %v2441_v60  ;;  %864 = vperm.xlu1 %2799, %v3281_v3   ;;  %v2325_v3 = vld [vmem:[%s4316_s1 + $0x48] sm:$0xf]  ;;  %v2784_v61 = vld [vmem:[%s4315_s0 + $0x46c] sm:$0xf] }
  0x5c   :  { %1286 = vmatpush.bf16.msrb.mxu0 %v2514_v2  ;;  %v2467_v2 = vld [vmem:[%s4315_s0 + $0x350] sm:$0xf0] }
  0x5d   :  { %803 = vmatpush.bf16.msra.mxu1 %v2174_v54  ;;  %2308 = vmatmul.msk.bf16.gmra.mxu2 %vm600_vm0, %v3048_v21  ;;  %v2569_v54 = vld [vmem:[%s4315_s0 + $0x408] sm:$0xf] }
  0x5e   :  { %1324 = vmatpush.bf16.msrb.mxu3 %v2390_v1  ;;  %1341 = vmatpush.bf16.msra.mxu2 %v2550_v14  ;;  %v2570_v59 = vor.u32 %v2774_v58, %v2569_v54  ;;  %v2747_v1 = vld [vmem:[%s4315_s0 + $0x344] sm:$0xf]  ;;  %v2409_v14 = vld [vmem:[%s4315_s0 + $0x2c8] sm:$0xf] }
  0x5f   :  { %v2470_v9 = vor.u32 %v2747_v1, %v2467_v2  ;;  %v2782_v2 = vld [vmem:[%s4315_s0 + $0x454] sm:$0xf0] }
  0x60   :  { %1287 = vmatpush.bf16.msrb.mxu0 %v2498_v18  ;;  %v2521_v18 = vld [vmem:[%s4315_s0 + $0x3a8] sm:$0xf] }
  0x61   :  { %804 = vmatpush.bf16.msra.mxu1 %v2158_v8  ;;  %v2738_v8 = vld [vmem:[%s4315_s0 + $0x2f4] sm:$0xf0] }
  0x62   :  { %1325 = vmatpush.bf16.msrb.mxu3 %v2374_v17  ;;  %1342 = vmatpush.bf16.msra.mxu2 %v2534_v27  ;;  %v2426_v11 = vor.u32 %v2738_v8, %v2425_v6  ;;  %v2410_v17 = vor.u32 %v2734_v16, %v2409_v14  ;;  %v2758_v27 = vld [vmem:[%s4315_s0 + $0x394] sm:$0xf0]  ;;  %v2772_v8 = vld [vmem:[%s4315_s0 + $0x40c] sm:$0xf] }
  0x63   :  { %786 = vmatmul.bf16.vlgmr.msra.gmra.mxu0 %v3112_v52  ;;  %v2457_v52 = vld [vmem:[%s4315_s0 + $0x328] sm:$0xf]  ;;  %v2768_v14 = vld [vmem:[%s4315_s0 + $0x3ec] sm:$0xf]  ;;  %v2327_v16 = vld [vmem:[%s4316_s1 + $0x54] sm:$0xf0] }
  0x64   :  { %1288 = vmatpush.bf16.msrb.mxu0 %v2482_v30  ;;  %805 = vmatmul.bf16.vlgmr.msra.gmra.mxu1 %v3120_v56  ;;  %v2458_v50 = vor.u32 %v2746_v48, %v2457_v52  ;;  %v2783_v56 = vld [vmem:[%s4315_s0 + $0x464] sm:$0xf]  ;;  %v3704_v30 = vor.u32 %v2713_v23, %v2325_v3  ;;  %v2473_v52 = vld [vmem:[%s4315_s0 + $0x348] sm:$0xf]  ;;  %v2750_v48 = vld [vmem:[%s4315_s0 + $0x354] sm:$0xf0] }
  0x65   :  { %1307 = vmatpush.bf16.msrb.mxu1 %v2610_v13  ;;  %2309 = vmatmul.msk.bf16.vlgmr.msra.gmra.mxu3 %vm600_vm0, %v2927_v29  ;;  %v2751_v29 = vld [vmem:[%s4315_s0 + $0x364] sm:$0xf]  ;;  %v2614_v57 = vor.u32 %v2783_v56, %v2611_v53  ;;  %v2766_v13 = vld [vmem:[%s4315_s0 + $0x3d4] sm:$0xf0]  ;;  %v2474_v56 = vor.u32 %v2750_v48, %v2473_v52  ;;  %v2732_v23 = vld [vmem:[%s4315_s0 + $0x2cc] sm:$0xf] }
  0x66   :  { %1326 = vmatpush.bf16.msrb.mxu3 %v2358_v28  ;;  %1343 = vmatpush.bf16.msra.mxu2 %v2518_v39  ;;  %v2486_v0 = vor.u32 %v2751_v29, %v2483_v55  ;;  %v2538_v15 = vor.u32 %v2766_v13, %v2537_v12  ;;  %v2617_v28 = vld [vmem:[%s4315_s0 + $0x468] sm:$0xf]  ;;  %v2754_v39 = vld [vmem:[%s4315_s0 + $0x374] sm:$0xf0]  ;;  %v2744_v29 = vld [vmem:[%s4315_s0 + $0x32c] sm:$0xf] }
  0x67   :  { %v2618_v36 = vor.u32 %v2786_v33, %v2617_v28  ;;  %v2490_v43 = vor.u32 %v2754_v39, %v2489_v38  ;;  %v2718_v53 = vld [vmem:[%s4315_s0 + $0x254] sm:$0xf0]  ;;  %v2459_v55 = vld [vmem:[%s4315_s0 + $0x338] sm:$0xf0]  ;;  %v2736_v12 = vld [vmem:[%s4315_s0 + $0x2ec] sm:$0xf] }
  0x68   :  { %1289 = vmatpush.bf16.msrb.mxu0 %v2466_v41  ;;  %v2709_v41 = vld [vmem:[%s4316_s1 + $0x34] sm:$0xf]  ;;  %v2462_v58 = vor.u32 %v2744_v29, %v2459_v55  ;;  %v2427_v13 = vld [vmem:[%s4315_s0 + $0x2f8] sm:$0xf0]  ;;  %v2728_v28 = vld [vmem:[%s4315_s0 + $0x2ac] sm:$0xf] }
  0x69   :  { %1308 = vmatpush.bf16.msrb.mxu1 %v2594_v25  ;;  %v2595_v25 = vld [vmem:[%s4315_s0 + $0x450] sm:$0xf0]  ;;  %v2760_v33 = vld [vmem:[%s4315_s0 + $0x3ac] sm:$0xf]  ;;  %v2603_v39 = vld [vmem:[%s4315_s0 + $0x458] sm:$0xf0] }
  0x6a   :  { %1327 = vmatpush.bf16.msrb.mxu3 %v2342_v40  ;;  %1344 = vmatpush.bf16.msra.mxu2 %v2502_v49  ;;  %v2361_v40 = vld [vmem:[%s4315_s0 + $0x268] sm:$0xf]  ;;  %v2780_v38 = vld [vmem:[%s4315_s0 + $0x44c] sm:$0xf]  ;;  %v2363_v52 = vld [vmem:[%s4315_s0 + $0x278] sm:$0xf0] }
  0x6b   :  { %v2362_v45 = vor.u32 %v2722_v4, %v2361_v40  ;;  %v2345_v49 = vld [vmem:[%s4315_s0 + $0x248] sm:$0xf]  ;;  %v2724_v40 = vld [vmem:[%s4315_s0 + $0x28c] sm:$0xf]  ;;  %v2507_v4 = vld [vmem:[%s4315_s0 + $0x398] sm:$0xf0] }
  0x6c   :  { %1364 = vmatpush.bf16.msra.mxu0 %v2614_v57  ;;  %v2346_v54 = vor.u32 %v2718_v53, %v2345_v49  ;;  %v2776_v57 = vld [vmem:[%s4315_s0 + $0x42c] sm:$0xf]  ;;  %v2347_v55 = vld [vmem:[%s4315_s0 + $0x258] sm:$0xf0] }
  0x6d   :  { %1377 = vmatpush.bf16.msra.mxu1 %v2458_v50  ;;  %1271 = vmatmul.bf16.vlgmr.msrb.gmra.mxu2 %v3632_v62  ;;  %v3751_v50 = vor.u32 %v2711_v44, %v2321_v10  ;;  %v2752_v48 = vld [vmem:[%s4315_s0 + $0x36c] sm:$0xf] }
  0x6e   :  { %1396 = vmatpush.bf16.msra.mxu3 %v2586_v47  ;;  %1345 = vmatpush.bf16.msra.mxu2 %v2486_v0  ;;  %v3740_v47 = vor.u32 %v2709_v41, %v2315_v42  ;;  %v2601_v0 = vld [vmem:[%s4315_s0 + $0x448] sm:$0xf]  ;;  %v2606_v41 = vor.u32 %v2780_v38, %v2603_v39  ;;  %v2379_v42 = vld [vmem:[%s4315_s0 + $0x298] sm:$0xf0]  ;;  %v2716_v29 = vld [vmem:[%s4315_s0 + $0x24c] sm:$0xf] }
  0x6f   :  { %v2602_v6 = vor.u32 %v2782_v2, %v2601_v0  ;;  %v2382_v10 = vor.u32 %v2724_v40, %v2379_v42 }
  0x71   :  { %1378 = vmatpush.bf16.msra.mxu1 %v2442_v63  ;;  %v2619_v63 = vld [vmem:[%s4315_s0 + $0x478] sm:$0xf0] }
  0x72   :  { %1397 = vmatpush.bf16.msra.mxu3 %v2570_v59  ;;  %1346 = vmatpush.bf16.msra.mxu2 %v2470_v9  ;;  %v2587_v59 = vld [vmem:[%s4315_s0 + $0x438] sm:$0xf0]  ;;  %v2622_v1 = vor.u32 %v2784_v61, %v2619_v63 }
  0x73   :  { %791 = vmatmul.bf16.gmra.mxu0 %v3237_v46  ;;  %v2522_v46 = vor.u32 %v2762_v19, %v2521_v18  ;;  %v2590_v60 = vor.u32 %v2776_v57, %v2587_v59  ;;  %v2571_v9 = vld [vmem:[%s4315_s0 + $0x418] sm:$0xf0]  ;;  %v2333_v19 = vld [vmem:[%s4316_s1 + $0x50] sm:$0xf]  ;;  %v2748_v57 = vld [vmem:[%s4315_s0 + $0x34c] sm:$0xf]  ;;  %v2350_v59 = vor.u32 %v2716_v29, %v2347_v55 }
  0x74   :  { %810 = vmatmul.bf16.gmra.mxu1 %v3248_v51  ;;  %v2779_v51 = vld [vmem:[%s4315_s0 + $0x444] sm:$0xf]  ;;  %v2555_v18 = vld [vmem:[%s4315_s0 + $0x3f8] sm:$0xf0] }
  0x75   :  { %1379 = vmatpush.bf16.msra.mxu1 %v2426_v11  ;;  %2310 = vmatmul.msk.bf16.gmra.mxu3 %vm600_vm0, %v3048_v21  ;;  %v2598_v26 = vor.u32 %v2779_v51, %v2595_v25  ;;  %v2505_v21 = vld [vmem:[%s4315_s0 + $0x388] sm:$0xf]  ;;  %v2574_v11 = vor.u32 %v2772_v8, %v2571_v9  ;;  %v2558_v3 = vor.u32 %v2768_v14, %v2555_v18  ;;  %v2764_v51 = vld [vmem:[%s4315_s0 + $0x3cc] sm:$0xf] }
  0x76   :  { %1398 = vmatpush.bf16.msra.mxu3 %v2554_v7  ;;  %v2506_v32 = vor.u32 %v2758_v27, %v2505_v21  ;;  %1421 = vmatpush.bf16.msrb.mxu2 %v2618_v36  ;;  %v2446_v7 = vor.u32 %v2740_v5, %v2443_v31  ;;  %v3834_v25 = vor.u32 %v2714_v20, %v2333_v19  ;;  %v2539_v21 = vld [vmem:[%s4315_s0 + $0x3d8] sm:$0xf0] }
  0x77   :  { %1365 = vmatpush.bf16.msra.mxu0 %v2598_v26  ;;  %v2542_v27 = vor.u32 %v2764_v51, %v2539_v21  ;;  %v2526_v36 = vor.u32 %v2760_v33, %v2523_v35 }
  0x79   :  { %1380 = vmatpush.bf16.msra.mxu1 %v2410_v17  ;;  %v2430_v17 = vor.u32 %v2736_v12, %v2427_v13 }
  0x7a   :  { %1399 = vmatpush.bf16.msra.mxu3 %v2538_v15  ;;  %1422 = vmatpush.bf16.msrb.mxu2 %v2602_v6  ;;  %v2712_v15 = vld [vmem:[%s4316_s1 + $0x4c] sm:$0xf] }
  0x7b   :  { %v3823_v22 = vor.u32 %v2712_v15, %v2327_v16 }
  0x7d   :  { %1381 = vmatpush.bf16.msra.mxu1 %v2394_v24  ;;  %1276 = vmatmul.bf16.gmra.mxu2 %v3704_v30  ;;  %v2411_v24 = vld [vmem:[%s4315_s0 + $0x2d8] sm:$0xf0] }
  0x7e   :  { %1400 = vmatpush.bf16.msra.mxu3 %v2522_v46  ;;  %v2414_v26 = vor.u32 %v2732_v23, %v2411_v24 }
  0x81   :  { %1382 = vmatpush.bf16.msra.mxu1 %v2378_v37 }
  0x82   :  { %1401 = vmatpush.bf16.msra.mxu3 %v2506_v32  ;;  %v2395_v32 = vld [vmem:[%s4315_s0 + $0x2b8] sm:$0xf0] }
  0x83   :  { %1290 = vmatmul.bf16.vlgmr.msrb.gmra.mxu0 %v3740_v47  ;;  %v2398_v34 = vor.u32 %v2728_v28, %v2395_v32 }
  0x84   :  { %2623 = vmatmul.msk.bf16.vlgmr.msrb.gmra.mxu1 %vm600_vm0, %v3751_v50  ;;  %1434 = vmatpush.bf16.msrb.mxu0 %v2462_v58 }
  0x85   :  { %1383 = vmatpush.bf16.msra.mxu1 %v2362_v45  ;;  %1328 = vmatmul.bf16.vlgmr.msrb.gmra.mxu3 %v3632_v62  ;;  %v2720_v45 = vld [vmem:[%s4315_s0 + $0x26c] sm:$0xf] }
  0x86   :  { %1402 = vmatpush.bf16.msra.mxu3 %v2490_v43  ;;  %v2756_v43 = vld [vmem:[%s4315_s0 + $0x38c] sm:$0xf]  ;;  %v2366_v49 = vor.u32 %v2720_v45, %v2363_v52 }
  0x87   :  { %v2510_v44 = vor.u32 %v2756_v43, %v2507_v4 }
  0x88   :  { %1435 = vmatpush.bf16.msrb.mxu0 %v2446_v7 }
  0x89   :  { %1384 = vmatpush.bf16.msra.mxu1 %v2346_v54  ;;  %v3931_v33 = vpop.permute.xlu2 %202 }
  0x8a   :  { %1403 = vmatpush.bf16.msra.mxu3 %v2474_v56  ;;  %v2491_v56 = vld [vmem:[%s4315_s0 + $0x378] sm:$0xf0] }
  0x8b   :  { %v2494_v53 = vor.u32 %v2752_v48, %v2491_v56 }
  0x8c   :  { %1436 = vmatpush.bf16.msrb.mxu0 %v2430_v17 }
  0x8d   :  { %1453 = vmatpush.bf16.msrb.mxu1 %v2590_v60  ;;  %1347 = vmatmul.bf16.vlgmr.msra.gmra.mxu2 %v3740_v47  ;;  %v2475_v60 = vld [vmem:[%s4315_s0 + $0x358] sm:$0xf0] }
  0x8e   :  { %1478 = vmatpush.bf16.msrb.mxu3 %v2622_v1  ;;  %2787 = vmatpush.bf16.msra.mxu2 %v2462_v58  ;;  %v2478_v63 = vor.u32 %v2748_v57, %v2475_v60 }
  0x90   :  { %v3821_v46 = vpop.f32.mrf.mxu2  ;;  %1437 = vmatpush.bf16.msrb.mxu0 %v2414_v26 }
  0x91   :  { %1454 = vmatpush.bf16.msrb.mxu1 %v2574_v11 }
  0x92   :  { %2788 = vmatpush.bf16.msra.mxu2 %v2446_v7  ;;  %1479 = vmatpush.bf16.msrb.mxu3 %v2606_v41  ;;  %v3910_v9 = vpop.permute.xlu0 %192 }
  0x93   :  { %1295 = vmatmul.bf16.gmra.mxu0 %v3823_v22 }
  0x94   :  { %2624 = vmatmul.msk.bf16.gmra.mxu1 %vm600_vm0, %v3834_v25  ;;  %1438 = vmatpush.bf16.msrb.mxu0 %v2398_v34 }
  0x95   :  { %1455 = vmatpush.bf16.msrb.mxu1 %v2558_v3  ;;  %1333 = vmatmul.bf16.gmra.mxu3 %v3704_v30 }
  0x96   :  { %2789 = vmatpush.bf16.msra.mxu2 %v2430_v17 }
  0x98   :  { %v3855_v37 = vpop.f32.mrf.mxu2  ;;  %1439 = vmatpush.bf16.msrb.mxu0 %v2382_v10 }
  0x99   :  { %1456 = vmatpush.bf16.msrb.mxu1 %v2542_v27 }
  0x9a   :  { %2790 = vmatpush.bf16.msra.mxu2 %v2414_v26  ;;  %v3917_v17 = vpop.permute.xlu0 %197 }
  0x9c   :  { %1440 = vmatpush.bf16.msrb.mxu0 %v2366_v49 }
  0x9d   :  { %1457 = vmatpush.bf16.msrb.mxu1 %v2526_v36  ;;  %1352 = vmatmul.bf16.gmra.mxu2 %v3823_v22 }
  0x9e   :  { %2791 = vmatpush.bf16.msra.mxu2 %v2398_v34 }
  0xa0   :  { %v3888_v54 = vpop.f32.mrf.mxu2  ;;  %v616_v58 = vpop.f32.mrf.mxu0  ;;  %1441 = vmatpush.bf16.msrb.mxu0 %v2350_v59 }
  0xa1   :  { %1458 = vmatpush.bf16.msrb.mxu1 %v2510_v44  ;;  %v635_v61 = vpop.f32.mrf.mxu1  ;;  %v617_v11 = vadd.f32 %v616_v58, %v3910_v9 }
  0xa2   :  { %2792 = vmatpush.bf16.msra.mxu2 %v2382_v10  ;;  %v3949_v4 = vpop.permute.xlu0 %207 }
  0xa3   :  { %2625 = vmatmul.msk.bf16.vlgmr.msra.gmra.mxu0 %vm600_vm0, %v3751_v50  ;;  %v636_v16 = vadd.f32 %v635_v61, %v617_v11 }
  0xa4   :  { %1385 = vmatmul.bf16.vlgmr.msra.gmra.mxu1 %v3632_v62 }
  0xa5   :  { %1459 = vmatpush.bf16.msrb.mxu1 %v2494_v53  ;;  %1404 = vmatmul.bf16.vlgmr.msra.gmra.mxu3 %v3740_v47  ;;  %v3923_v19 = vadd.f32 %v3821_v46, %v636_v16 }
  0xa6   :  { %2793 = vmatpush.bf16.msra.mxu2 %v2366_v49 }
  0xa7   :  { %v4324_v27 = vmax.f32 %v3923_v19, 0.0 }
  0xa8   :  { %v3906_v0 = vpop.f32.mrf.mxu2  ;;  %v673_v1 = vpop.f32.mrf.mxu3 }
  0xa9   :  { %1460 = vmatpush.bf16.msrb.mxu1 %v2478_v63  ;;  %v618_v2 = vpop.f32.mrf.mxu0  ;;  %v637_v5 = vpop.f32.mrf.mxu1  ;;  %v674_v18 = vadd.f32 %v673_v1, %v3910_v9 }
  0xaa   :  { %2794 = vmatpush.bf16.msra.mxu2 %v2350_v59  ;;  %v619_v20 = vadd.f32 %v618_v2, %v3917_v17 }
  0xac   :  { %v638_v28 = vadd.f32 %v637_v5, %v619_v20 }
  0xad   :  { %2627 = vmatmul.msk.bf16.vlgmr.msrb.gmra.mxu2 %vm600_vm0, %v3751_v50 }
  0xae   :  { %v3942_v35 = vadd.f32 %v3855_v37, %v638_v28 }
  0xb0   :  { %v692_v31 = vpop.f32.mrf.mxu2  ;;  %v675_v6 = vpop.f32.mrf.mxu3 }
  0xb1   :  { %v621_v7 = vpop.f32.mrf.mxu0  ;;  %v640_v8 = vpop.f32.mrf.mxu1  ;;  %v693_v3 = vadd.f32 %v692_v31, %v674_v18  ;;  %v676_v46 = vadd.f32 %v675_v6, %v3917_v17 }
  0xb2   :  { %v622_v36 = vadd.f32 %v621_v7, %v3931_v33 }
  0xb3   :  { %2626 = vmatmul.msk.bf16.gmra.mxu0 %vm600_vm0, %v3834_v25 }
  0xb4   :  { %1390 = vmatmul.bf16.gmra.mxu1 %v3704_v30  ;;  %v641_v42 = vadd.f32 %v640_v8, %v622_v36 }
  0xb5   :  { %1409 = vmatmul.bf16.gmra.mxu3 %v3823_v22 }
  0xb6   :  { %v3958_v44 = vadd.f32 %v3888_v54, %v641_v42 }
  0xb8   :  { %v694_v12 = vpop.f32.mrf.mxu2  ;;  %v678_v13 = vpop.f32.mrf.mxu3  ;;  %v4326_v29 = vmax.f32 %v3958_v44, 0.0 }
  0xb9   :  { %v623_v14 = vpop.f32.mrf.mxu0  ;;  %v642_v15 = vpop.f32.mrf.mxu1  ;;  %v679_v37 = vadd.f32 %v678_v13, %v3931_v33 }
  0xba   :  { %v624_v45 = vadd.f32 %v623_v14, %v3949_v4 }
  0xbc   :  { %v643_v55 = vadd.f32 %v642_v15, %v624_v45 }
  0xbd   :  { %2628 = vmatmul.msk.bf16.gmra.mxu2 %vm600_vm0, %v3834_v25 }
  0xbe   :  { %v3974_v59 = vadd.f32 %v3906_v0, %v643_v55 }
  0xc0   :  { %v697_v23 = vpop.f32.mrf.mxu2  ;;  %v680_v24 = vpop.f32.mrf.mxu3  ;;  %v4322_v5 = vmax.f32 %v3974_v59, 0.0 }
  0xc1   :  { %v711_v51 = vpop.f32.mrf.mxu0  ;;  %v730_v21 = vpop.f32.mrf.mxu1  ;;  %v698_v52 = vadd.f32 %v697_v23, %v679_v37  ;;  %v681_v54 = vadd.f32 %v680_v24, %v3949_v4 }
  0xc2   :  { %v3926_v26 = vadd.f32 %v711_v51, %v693_v3  ;;  %v731_v11 = vadd.f32 %v730_v21, %v3910_v9 }
  0xc3   :  { %1442 = vmatmul.bf16.vlgmr.msrb.gmra.mxu0 %v3632_v62  ;;  %v695_v62 = vadd.f32 %v694_v12, %v676_v46 }
  0xc4   :  { %v4323_v32 = vmax.f32 %v3926_v26, 0.0  ;;  %1461 = vmatmul.bf16.vlgmr.msrb.gmra.mxu1 %v3740_v47 }
  0xc5   :  { %2629 = vmatmul.msk.bf16.vlgmr.msrb.gmra.mxu3 %vm600_vm0, %v3751_v50  ;;  %v839_v50 = vmax.f32 %v3942_v35, 0.0 }
  0xc6   :  { %v1507_v34 = vadd.f32 %v4323_v32, %v4324_v27 }
  0xc8   :  { %v699_v38 = vpop.f32.mrf.mxu2  ;;  %1508 = vadd.xlane.f32.xlu2 %v1507_v34  ;;  %v749_v39 = vpop.f32.mrf.mxu3 }
  0xc9   :  { %v713_v47 = vpop.f32.mrf.mxu0  ;;  %v732_v41 = vpop.f32.mrf.mxu1  ;;  %v700_v60 = vadd.f32 %v699_v38, %v681_v54  ;;  %v750_v15 = vadd.f32 %v749_v39, %v731_v11 }
  0xca   :  { %v3945_v40 = vadd.f32 %v713_v47, %v695_v62  ;;  %v733_v46 = vadd.f32 %v732_v41, %v3917_v17 }
  0xcc   :  { %v840_v43 = vmax.f32 %v3945_v40, 0.0 }
  0xcd   :  { %1447 = vmatmul.bf16.vlgmr.msra.gmra.mxu2 %v3704_v30 }
  0xce   :  { %v1510_v10 = vadd.f32 %v840_v43, %v839_v50 }
  0xd0   :  { %v768_v48 = vpop.f32.mrf.mxu2  ;;  %1511 = vadd.xlane.f32.xlu0 %v1510_v10  ;;  %v751_v49 = vpop.f32.mrf.mxu3 }
  0xd1   :  { %v716_v56 = vpop.f32.mrf.mxu0  ;;  %v735_v30 = vpop.f32.mrf.mxu1  ;;  %v3987_v18 = vadd.f32 %v768_v48, %v750_v15  ;;  %v752_v36 = vadd.f32 %v751_v49, %v733_v46 }
  0xd2   :  { %v3961_v53 = vadd.f32 %v716_v56, %v698_v52  ;;  %v736_v41 = vadd.f32 %v735_v30, %v3931_v33 }
  0xd3   :  { %v837_v21 = vmax.f32 %v3987_v18, 0.0 }
  0xd4   :  { %v4325_v57 = vmax.f32 %v3961_v53, 0.0  ;;  %1466 = vmatmul.bf16.gmra.mxu1 %v3823_v22 }
  0xd5   :  { %2630 = vmatmul.msk.bf16.gmra.mxu3 %vm600_vm0, %v3834_v25 }
  0xd6   :  { %v1513_v58 = vadd.f32 %v4325_v57, %v4326_v29 }
  0xd8   :  { %v770_v61 = vpop.f32.mrf.mxu2  ;;  %1514 = vadd.xlane.f32.xlu0 %v1513_v58  ;;  %v754_v63 = vpop.f32.mrf.mxu3 }
  0xd9   :  { %v718_v1 = vpop.f32.mrf.mxu0  ;;  %v737_v22 = vpop.f32.mrf.mxu1  ;;  %v4001_v38 = vadd.f32 %v770_v61, %v752_v36  ;;  %v755_v49 = vadd.f32 %v754_v63, %v736_v41 }
  0xda   :  { %v3976_v2 = vadd.f32 %v718_v1, %v700_v60  ;;  %v738_v0 = vadd.f32 %v737_v22, %v3949_v4 }
  0xdb   :  { %v4320_v52 = vmax.f32 %v4001_v38, 0.0 }
  0xdc   :  { %v4321_v25 = vmax.f32 %v3976_v2, 0.0 }
  0xde   :  { %v1516_v31 = vadd.f32 %v4321_v25, %v4322_v5 }
  0xe0   :  { %v773_v6 = vpop.f32.mrf.mxu2  ;;  %1517 = vadd.xlane.f32.xlu1 %v1516_v31  ;;  %v756_v7 = vpop.f32.mrf.mxu3 }
  0xe1   :  { %v787_v8 = vpop.f32.mrf.mxu0  ;;  %v757_v12 = vadd.f32 %v756_v7, %v738_v0  ;;  %v806_v14 = vpop.f32.mrf.mxu1  ;;  %v4013_v54 = vadd.f32 %v773_v6, %v755_v49 }
  0xe2   :  { %v788_v13 = vadd.f32 %v787_v8, %v3910_v9 }
  0xe3   :  { %v4328_v22 = vmax.f32 %v4013_v54, 0.0  ;;  %v4335_v18 = vmax.f32 %v4013_v54, 0.0 }
  0xe4   :  { %v807_v16 = vadd.f32 %v806_v14, %v788_v13 }
  0xe8   :  { %v775_v20 = vpop.f32.mrf.mxu2  ;;  %v825_v23 = vpop.f32.mrf.mxu3 }
  0xe9   :  { %v3989_v3 = vadd.f32 %v775_v20, %v757_v12  ;;  %v789_v24 = vpop.f32.mrf.mxu0  ;;  %v3991_v51 = vadd.f32 %v825_v23, %v807_v16  ;;  %v808_v28 = vpop.f32.mrf.mxu1 }
  0xea   :  { %v790_v9 = vadd.f32 %v789_v24, %v3917_v17 }
  0xeb   :  { %v4331_v34 = vmax.f32 %v3991_v51, 0.0  ;;  %v4334_v40 = vmax.f32 %v3991_v51, 0.0 }
  0xec   :  { %v809_v39 = vadd.f32 %v808_v28, %v790_v9  ;;  %v853_v28 = vpop.permute.xlu1 %852 }
  0xed   :  { %v1707_v62 = vadd.f32 %v4331_v34, %v837_v21 }
  0xef   :  { %1708 = vadd.xlane.f32.xlu2 %v1707_v62 }
  0xf0   :  { %v1272_v47 = vpop.f32.mrf.mxu2  ;;  %v827_v42 = vpop.f32.mrf.mxu3 }
  0xf1   :  { %v792_v37 = vpop.f32.mrf.mxu0  ;;  %v4004_v10 = vadd.f32 %v827_v42, %v809_v39  ;;  %v811_v17 = vpop.f32.mrf.mxu1  ;;  %v1273_v62 = vadd.f32 %v1272_v47, %v853_v28 }
  0xf2   :  { %v793_v45 = vadd.f32 %v792_v37, %v3931_v33 }
  0xf3   :  { %v4319_v48 = vmax.f32 %v4004_v10, 0.0 }
  0xf4   :  { %v812_v56 = vadd.f32 %v811_v17, %v793_v45  ;;  %v857_v41 = vpop.permute.xlu1 %856 }
  0xf5   :  { %v1710_v55 = vadd.f32 %v4319_v48, %v4320_v52 }
  0xf7   :  { %1711 = vadd.xlane.f32.xlu0 %v1710_v55 }
  0xf8   :  { %v1274_v30 = vpop.f32.mrf.mxu2  ;;  %v830_v58 = vpop.f32.mrf.mxu3 }
  0xf9   :  { %v794_v60 = vpop.f32.mrf.mxu0  ;;  %v4015_v61 = vadd.f32 %v830_v58, %v812_v56  ;;  %v813_v1 = vpop.f32.mrf.mxu1  ;;  %v1275_v58 = vadd.f32 %v1274_v30, %v857_v41 }
  0xfa   :  { %v795_v33 = vadd.f32 %v794_v60, %v3949_v4 }
  0xfb   :  { %v4327_v63 = vmax.f32 %v4015_v61, 0.0  ;;  %v4336_v51 = vmax.f32 %v4015_v61, 0.0  ;;  %v4339_v61 = vmax.f32 %v3923_v19, 0.0 }
  0xfc   :  { %v814_v31 = vadd.f32 %v813_v1, %v795_v33 }
  0xfd   :  { %v1713_v0 = vadd.f32 %v4327_v63, %v4328_v22  ;;  %v865_v63 = vpop.permute.xlu1 %864 }
  0xff   :  { %1714 = vadd.xlane.f32.xlu2 %v1713_v0 }
 0x100   :  { %v1277_v6 = vpop.f32.mrf.mxu2  ;;  %v832_v7 = vpop.f32.mrf.mxu3 }
 0x101   :  { %v1291_v8 = vpop.f32.mrf.mxu0  ;;  %v4024_v11 = vadd.f32 %v832_v7, %v814_v31  ;;  %v1310_v12 = vpop.f32.mrf.mxu1 }
 0x102   :  { %v1292_v42 = vadd.f32 %v1291_v8, %v1273_v62  ;;  %v4040_v8 = vpop.permute.xlu2 %860 }
 0x103   :  { %v1278_v30 = vadd.f32 %v1277_v6, %v4040_v8 }
 0x104   :  { %v1311_v45 = vadd.f32 %v1310_v12, %v1292_v42 }
 0x106   :  { %v4034_v1 = vmax.f32 %v1311_v45, 0.0 }
 0x108   :  { %v4026_v13 = vpop.f32.mrf.mxu2  ;;  %v1329_v4 = vpop.f32.mrf.mxu3 }
 0x109   :  { %v1293_v14 = vpop.f32.mrf.mxu0  ;;  %v1312_v15 = vpop.f32.mrf.mxu1  ;;  %v1330_v37 = vadd.f32 %v1329_v4, %v853_v28 }
 0x10a   :  { %v1294_v31 = vadd.f32 %v1293_v14, %v1275_v58 }
 0x10c   :  { %v1313_v12 = vadd.f32 %v1312_v15, %v1294_v31 }
 0x110   :  { %v1348_v16 = vpop.f32.mrf.mxu2  ;;  %v1331_v20 = vpop.f32.mrf.mxu3 }
 0x111   :  { %v1296_v23 = vpop.f32.mrf.mxu0  ;;  %v1315_v24 = vpop.f32.mrf.mxu1  ;;  %v1349_v17 = vadd.f32 %v1348_v16, %v1330_v37  ;;  %v1332_v47 = vadd.f32 %v1331_v20, %v857_v41 }
 0x112   :  { %v1297_v14 = vadd.f32 %v1296_v23, %v1278_v30 }
 0x114   :  { %v1316_v15 = vadd.f32 %v1315_v24, %v1297_v14 }
 0x118   :  { %v1350_v46 = vpop.f32.mrf.mxu2  ;;  %v1334_v9 = vpop.f32.mrf.mxu3 }
 0x119   :  { %v4028_v36 = vpop.f32.mrf.mxu0  ;;  %v4030_v39 = vpop.f32.mrf.mxu1  ;;  %v1351_v4 = vadd.f32 %v1350_v46, %v1332_v47  ;;  %v1335_v20 = vadd.f32 %v1334_v9, %v4040_v8 }
 0x120   :  { %v1353_v49 = vpop.f32.mrf.mxu2  ;;  %v4032_v56 = vpop.f32.mrf.mxu3 }
 0x121   :  { %v1367_v55 = vpop.f32.mrf.mxu0  ;;  %v1386_v33 = vpop.f32.mrf.mxu1  ;;  %v1354_v46 = vadd.f32 %v1353_v49, %v1335_v20 }
 0x122   :  { %v1368_v60 = vadd.f32 %v1367_v55, %v1349_v17  ;;  %v4043_v17 = vmax.f32 %v1313_v12, 0.0  ;;  %v1387_v20 = vadd.f32 %v1386_v33, %v853_v28 }
 0x124   :  { %v4036_v0 = vmax.f32 %v1368_v60, 0.0 }
 0x126   :  { %v1519_v7 = vadd.f32 %v4036_v0, %v4034_v1 }
 0x128   :  { %v1355_v16 = vpop.f32.mrf.mxu2  ;;  %1520 = vadd.xlane.f32.xlu1 %v1519_v7  ;;  %v1405_v62 = vpop.f32.mrf.mxu3 }
 0x129   :  { %v1369_v42 = vpop.f32.mrf.mxu0  ;;  %v1388_v45 = vpop.f32.mrf.mxu1 }
 0x12a   :  { %v1370_v37 = vadd.f32 %v1369_v42, %v1351_v4  ;;  %v4050_v4 = vmax.f32 %v1316_v15, 0.0  ;;  %v1389_v27 = vadd.f32 %v1388_v45, %v857_v41 }
 0x12c   :  { %v4045_v55 = vmax.f32 %v1370_v37, 0.0 }
 0x12e   :  { %v1522_v58 = vadd.f32 %v4045_v55, %v4043_v17 }
 0x130   :  { %v1424_v60 = vpop.f32.mrf.mxu2  ;;  %1523 = vadd.xlane.f32.xlu2 %v1522_v58  ;;  %v1407_v31 = vpop.f32.mrf.mxu3 }
 0x131   :  { %v1372_v47 = vpop.f32.mrf.mxu0  ;;  %v1391_v6 = vpop.f32.mrf.mxu1  ;;  %v1408_v22 = vadd.f32 %v1407_v31, %v1389_v27 }
 0x132   :  { %v1373_v7 = vadd.f32 %v1372_v47, %v1354_v46  ;;  %v1406_v46 = vadd.f32 %v1405_v62, %v1387_v20  ;;  %v1337_v20 = vadd.f32 %v4032_v56, %v865_v63  ;;  %v1392_v45 = vadd.f32 %v1391_v6, %v4040_v8 }
 0x134   :  { %v4052_v12 = vmax.f32 %v1373_v7, 0.0  ;;  %v1425_v47 = vadd.f32 %v1424_v60, %v1406_v46  ;;  %v1280_v60 = vadd.f32 %v4026_v13, %v865_v63 }
 0x136   :  { %v1525_v23 = vadd.f32 %v4052_v12, %v4050_v4  ;;  %v4056_v57 = vmax.f32 %v1425_v47, 0.0 }
 0x138   :  { %v1426_v42 = vpop.f32.mrf.mxu2  ;;  %1526 = vadd.xlane.f32.xlu1 %v1525_v23  ;;  %v1410_v9 = vpop.f32.mrf.mxu3  ;;  %v1855_v35 = vsub.f32 %v837_v21, %v4056_v57 }
 0x139   :  { %v1374_v30 = vpop.f32.mrf.mxu0  ;;  %v1393_v37 = vpop.f32.mrf.mxu1 }
 0x140   :  { %v1429_v24 = vpop.f32.mrf.mxu2  ;;  %v1412_v49 = vpop.f32.mrf.mxu3 }
 0x141   :  { %v1443_v14 = vpop.f32.mrf.mxu0  ;;  %v1462_v58 = vpop.f32.mrf.mxu1 }
 0x142   :  { %v1444_v48 = vadd.f32 %v1443_v14, %v853_v28  ;;  %v1427_v28 = vadd.f32 %v1426_v42, %v1408_v22 }
 0x144   :  { %v1463_v15 = vadd.f32 %v1462_v58, %v1444_v48  ;;  %v4066_v27 = vmax.f32 %v1427_v28, 0.0 }
 0x148   :  { %v1431_v52 = vpop.f32.mrf.mxu2  ;;  %v1481_v7 = vpop.f32.mrf.mxu3 }
 0x149   :  { %v1445_v25 = vpop.f32.mrf.mxu0  ;;  %v1482_v5 = vadd.f32 %v1481_v7, %v1463_v15  ;;  %v1464_v32 = vpop.f32.mrf.mxu1 }
 0x14a   :  { %v1446_v29 = vadd.f32 %v1445_v25, %v857_v41  ;;  %v1356_v41 = vadd.f32 %v1355_v16, %v1337_v20 }
 0x14b   :  { %v4058_v23 = vmax.f32 %v1482_v5, 0.0  ;;  %v1299_v5 = vadd.f32 %v4028_v36, %v1280_v60 }
 0x14c   :  { %v1465_v62 = vadd.f32 %v1464_v32, %v1446_v29  ;;  %v1411_v32 = vadd.f32 %v1410_v9, %v1392_v45  ;;  %v1375_v29 = vadd.f32 %v1374_v30, %v1356_v41  ;;  %v1512_v41 = vpop.xlane.xlu0 %1511 }
 0x14d   :  { %v1719_v33 = vadd.f32 %v4058_v23, %v4056_v57  ;;  %v1318_v56 = vadd.f32 %v4030_v39, %v1299_v5 }
 0x14e   :  { %v1430_v42 = vadd.f32 %v1429_v24, %v1411_v32  ;;  %v4074_v47 = vmax.f32 %v1375_v29, 0.0 }
 0x14f   :  { %1720 = vadd.xlane.f32.xlu1 %v1719_v33  ;;  %v4076_v15 = vmax.f32 %v1318_v56, 0.0 }
 0x150   :  { %v1448_v48 = vpop.f32.mrf.mxu2  ;;  %v1483_v14 = vpop.f32.mrf.mxu3  ;;  %v4078_v7 = vmax.f32 %v1430_v42, 0.0 }
 0x151   :  { %v1484_v58 = vadd.f32 %v1483_v14, %v1465_v62  ;;  %v1467_v25 = vpop.f32.mrf.mxu1  ;;  %v1449_v31 = vadd.f32 %v1448_v48, %v4040_v8  ;;  %v1394_v8 = vadd.f32 %v1393_v37, %v865_v63  ;;  %v1528_v24 = vadd.f32 %v4074_v47, %v4076_v15 }
 0x152   :  { %v4329_v37 = vmax.f32 %v4024_v11, 0.0  ;;  %v1859_v21 = vsub.f32 %v4335_v18, %v4078_v7 }
 0x153   :  { %v4069_v22 = vmax.f32 %v1484_v58, 0.0  ;;  %v1468_v6 = vadd.f32 %v1467_v25, %v1449_v31  ;;  %v1413_v28 = vadd.f32 %v1412_v49, %v1394_v8  ;;  %v1509_v58 = vpop.xlane.xlu2 %1508  ;;  %v1518_v25 = vpop.xlane.xlu1 %1517 }
 0x154   :  { %v1515_v29 = vpop.xlane.xlu0 %1514 }
 0x155   :  { %v1722_v13 = vadd.f32 %v4069_v22, %v4066_v27  ;;  %v1432_v62 = vadd.f32 %v1431_v52, %v1413_v28  ;;  %v177_v28 = vld [vmem:[%s4317_s2] sm:$0xff] }
 0x157   :  { %1723 = vadd.xlane.f32.xlu2 %v1722_v13  ;;  %v4088_v20 = vmax.f32 %v1432_v62, 0.0 }
 0x158   :  { %v1450_v46 = vpop.f32.mrf.mxu2  ;;  %v1486_v36 = vpop.f32.mrf.mxu3 }
 0x159   :  { %v1487_v16 = vadd.f32 %v1486_v36, %v1468_v6  ;;  %v1451_v9 = vadd.f32 %v1450_v46, %v865_v63  ;;  %v1469_v33 = vpop.f32.mrf.mxu1  ;;  %v4330_v63 = vmax.f32 %v3989_v3, 0.0 }
 0x15b   :  { %v4080_v30 = vmax.f32 %v1487_v16, 0.0  ;;  %v1470_v48 = vadd.f32 %v1469_v33, %v1451_v9  ;;  %v1716_v52 = vadd.f32 %v4329_v37, %v4330_v63  ;;  %v178_v33 = vld [vmem:[%s4317_s2 + $0x8] sm:$0xff] }
 0x15d   :  { %v1725_v39 = vadd.f32 %v4080_v30, %v4078_v7 }
 0x15f   :  { %1726 = vadd.xlane.f32.xlu0 %v1725_v39  ;;  %1529 = vadd.xlane.f32.xlu2 %v1528_v24  ;;  %v179_v24 = vld [vmem:[%s4317_s2 + $0x10] sm:$0xff] }
 0x160   :  { %v1488_v60 = vpop.f32.mrf.mxu3 }
 0x161   :  { %v1489_v14 = vadd.f32 %v1488_v60, %v1470_v48 }
 0x162   :  { %v1709_v5 = vpop.xlane.xlu2 %1708 }
 0x163   :  { %v4090_v45 = vmax.f32 %v1489_v14, 0.0 }
 0x165   :  { %v1728_v49 = vadd.f32 %v4090_v45, %v4088_v20 }
 0x167   :  { %1729 = vadd.xlane.f32.xlu1 %v1728_v49  ;;  %1717 = vadd.xlane.f32.xlu0 %v1716_v52 }
 0x16a   :  { %v1712_v36 = vpop.xlane.xlu0 %1711 }
 0x172   :  { %v1715_v31 = vpop.xlane.xlu2 %1714 }
 0x19b   :  { %v1521_v32 = vpop.xlane.xlu1 %1520 }
 0x19c   :  { %v1531_v6 = vadd.f32 %v1521_v32, %v1509_v58 }
 0x19e   :  { %v1535_v9 = vmul.f32 0.00390625, %v1531_v6  ;;  %v180_v6 = vld [vmem:[%s4317_s2 + $0x18] sm:$0xff] }
 0x1a0   :  { %v1539_v14 = vmul.f32 %v1535_v9, %v177_v28 }
 0x1a3   :  { %v1524_v13 = vpop.xlane.xlu2 %1523 }
 0x1a4   :  { %v1532_v42 = vadd.f32 %v1524_v13, %v1512_v41 }
 0x1a6   :  { %v1536_v8 = vmul.f32 0.00390625, %v1532_v42  ;;  %v1543_v42 = vsel %vm600_vm0, %v1539_v14, 0.0 }
 0x1a8   :  { %v1540_v48 = vmul.f32 %v1536_v8, %v178_v33 }
 0x1aa   :  { %v1544_v32 = vsel %vm600_vm0, %v1540_v48, 0.0 }
 0x1ab   :  { %v1527_v56 = vpop.xlane.xlu1 %1526  ;;  %v1545_v9 = vadd.f32 %v1544_v32, %v1543_v42 }
 0x1ac   :  { %v1533_v46 = vadd.f32 %v1527_v56, %v1515_v29 }
 0x1ae   :  { %v1537_v39 = vmul.f32 0.00390625, %v1533_v46 }
 0x1b0   :  { %v1541_v49 = vmul.f32 %v1537_v39, %v179_v24 }
 0x1b2   :  { %v1546_v46 = vsel %vm600_vm0, %v1541_v49, 0.0 }
 0x1c2   :  { %v1721_v62 = vpop.xlane.xlu1 %1720 }
 0x1c3   :  { %v1731_v52 = vadd.f32 %v1721_v62, %v1709_v5  ;;  %v1547_v62 = vadd.f32 %v1546_v46, %v1545_v9 }
 0x1c5   :  { %v1735_v8 = vmul.f32 0.00390625, %v1731_v52 }
 0x1c7   :  { %v1739_v37 = vmul.f32 %v1735_v8, %v177_v28 }
 0x1c9   :  { %v1743_v49 = vsel %vm600_vm0, %v1739_v37, 0.0 }
 0x1ca   :  { %v1724_v16 = vpop.xlane.xlu2 %1723 }
 0x1cb   :  { %v1732_v60 = vadd.f32 %v1724_v16, %v1712_v36 }
 0x1cd   :  { %v1736_v29 = vmul.f32 0.00390625, %v1732_v60 }
 0x1cf   :  { %v1740_v5 = vmul.f32 %v1736_v29, %v178_v33 }
 0x1d2   :  { %v1727_v58 = vpop.xlane.xlu0 %1726  ;;  %v1530_v41 = vpop.xlane.xlu2 %1529 }
 0x1d3   :  { %v1733_v13 = vadd.f32 %v1727_v58, %v1715_v31  ;;  %v1534_v56 = vadd.f32 %v1530_v41, %v1518_v25  ;;  %v1744_v58 = vsel %vm600_vm0, %v1740_v5, 0.0 }
 0x1d4   :  { %v1745_v32 = vadd.f32 %v1744_v58, %v1743_v49 }
 0x1d5   :  { %v1737_v36 = vmul.f32 0.00390625, %v1733_v13  ;;  %v1538_v16 = vmul.f32 0.00390625, %v1534_v56 }
 0x1d7   :  { %v1542_v39 = vmul.f32 %v1538_v16, %v180_v6  ;;  %v1741_v48 = vmul.f32 %v1737_v36, %v179_v24  ;;  %v189_v16 = vld [vmem:[%s4317_s2 + $0x60] sm:$0x1] }
 0x1d9   :  { %v1548_v31 = vsel %vm600_vm0, %v1542_v39, 0.0  ;;  %v1746_v52 = vsel %vm600_vm0, %v1741_v48, 0.0 }
 0x1da   :  { %v1549_v25 = vadd.f32 %v1548_v31, %v1547_v62  ;;  %v1730_v60 = vpop.xlane.xlu1 %1729  ;;  %v1718_v14 = vpop.xlane.xlu0 %1717  ;;  %v1747_v56 = vadd.f32 %v1746_v52, %v1745_v32  ;;  %v181_v31 = vld [vmem:[%s4317_s2 + $0x20] sm:$0xff] }
 0x1db   :  { %v1734_v41 = vadd.f32 %v1730_v60, %v1718_v14 }
 0x1dc   :  { %v1550_v63 = vrot.slane %v1549_v25, 4 }
 0x1dd   :  { %v1738_v13 = vmul.f32 0.00390625, %v1734_v41 }
 0x1de   :  { %v1551_v33 = vadd.f32 %v1550_v63, %v1549_v25  ;;  %v183_v63 = vld [vmem:[%s4317_s2 + $0x30] sm:$0xff] }
 0x1df   :  { %v1742_v29 = vmul.f32 %v1738_v13, %v180_v6  ;;  %v182_v6 = vld [vmem:[%s4317_s2 + $0x28] sm:$0xff] }
 0x1e0   :  { %v1552_v28 = vrot.slane %v1551_v33, 2 }
 0x1e1   :  { %v1748_v24 = vsel %vm600_vm0, %v1742_v29, 0.0 }
 0x1e2   :  { %v1553_v42 = vadd.f32 %v1552_v28, %v1551_v33  ;;  %v1749_v46 = vadd.f32 %v1748_v24, %v1747_v56  ;;  %v184_v56 = vld [vmem:[%s4317_s2 + $0x38] sm:$0xff] }
 0x1e4   :  { %v1554_v8 = vrot.slane %v1553_v42, 1  ;;  %v1750_v36 = vrot.slane %v1749_v46, 4 }
 0x1e6   :  { %v1555_v9 = vadd.f32 %v1554_v8, %v1553_v42  ;;  %v1751_v37 = vadd.f32 %v1750_v36, %v1749_v46 }
 0x1e8   :  { %v1752_v5 = vrot.slane %v1751_v37, 2  ;;  %v1556_v39 = vadd.f32 %v1555_v9, %v189_v16 }
 0x1ea   :  { %v1753_v62 = vadd.f32 %v1752_v5, %v1751_v37  ;;  %v1557_v48 = vmax.f32 %v1556_v39, 0.0 }
 0x1ec   :  { %v1754_v25 = vrot.slane %v1753_v62, 1  ;;  %v1558_v60 = vperm.slane %v1557_v48, 0 }
 0x1ee   :  { %v1755_v14 = vadd.f32 %v1754_v25, %v1753_v62  ;;  %v1561_v58 = vmul.f32 %v1558_v60, %v183_v63  ;;  %v1560_v41 = vmul.f32 %v1558_v60, %v182_v6  ;;  %v1559_v49 = vmul.f32 %v1558_v60, %v181_v31  ;;  %v2838_v25 = vld [vmem:[%s4317_s2 + $0x48] sm:$0xff] }
 0x1ef   :  { %v1562_v24 = vmul.f32 %v1558_v60, %v184_v56 }
 0x1f0   :  { %v1569_v52 = vsel %vm600_vm0, %v1561_v58, 0.0  ;;  %v1566_v13 = vsel %vm600_vm0, %v1560_v41, 0.0  ;;  %v1563_v32 = vsel %vm600_vm0, %v1559_v49, 0.0  ;;  %v1756_v33 = vadd.f32 %v1755_v14, %v189_v16 }
 0x1f1   :  { %1570 = vadd.xlane.f32.xlu1 %v1569_v52  ;;  %1567 = vadd.xlane.f32.xlu0 %v1566_v13  ;;  %v1572_v16 = vsel %vm600_vm0, %v1562_v24, 0.0  ;;  %v2843_v52 = vmov 2  }
 0x1f2   :  { %1564 = vadd.xlane.f32.xlu2 %v1563_v32  ;;  %v1757_v29 = vmax.f32 %v1756_v33, 0.0  ;;  %2802 = vset.pattern.permute.xlu1 %v2843_v52 }
 0x1f3   :  { %2803 = vset.pattern.permute.xlu2 %v2843_v52  ;;  %2804 = vset.pattern.permute.xlu0 %v2843_v52 }
 0x1f4   :  { %v1758_v28 = vperm.slane %v1757_v29, 0 }
 0x1f6   :  { %v1760_v42 = vmul.f32 %v1758_v28, %v182_v6  ;;  %v1759_v46 = vmul.f32 %v1758_v28, %v181_v31  ;;  %v1762_v9 = vmul.f32 %v1758_v28, %v184_v56  ;;  %v1761_v37 = vmul.f32 %v1758_v28, %v183_v63  ;;  %v2837_v6 = vld [vmem:[%s4317_s2 + $0x50] sm:$0xff]  ;;  %v2839_v63 = vld [vmem:[%s4317_s2 + $0x40] sm:$0xff] }
 0x1f8   :  { %v1766_v8 = vsel %vm600_vm0, %v1760_v42, 0.0  ;;  %v1763_v36 = vsel %vm600_vm0, %v1759_v46, 0.0  ;;  %v1772_v5 = vsel %vm600_vm0, %v1762_v9, 0.0  ;;  %v1769_v39 = vsel %vm600_vm0, %v1761_v37, 0.0 }
 0x1f9   :  { %1767 = vadd.xlane.f32.xlu1 %v1766_v8  ;;  %1764 = vadd.xlane.f32.xlu0 %v1763_v36  ;;  %v2840_v8 = vld [vmem:[%s4317_s2 + $0x58] sm:$0xff] }
 0x1fa   :  { %1573 = vadd.xlane.f32.xlu2 %v1572_v16 }
 0x201   :  { %1773 = vadd.xlane.f32.xlu0 %v1772_v5 }
 0x202   :  { %1770 = vadd.xlane.f32.xlu2 %v1769_v39 }
 0x264   :  { %v1571_v62 = vpop.xlane.xlu1 %1570  ;;  %v1568_v48 = vpop.xlane.xlu0 %1567 }
 0x265   :  { %v1577_v31 = vadd.f32 %v2837_v6, %v1571_v62  ;;  %v1576_v60 = vadd.f32 %v2838_v25, %v1568_v48  ;;  %v1565_v14 = vpop.xlane.xlu2 %1564 }
 0x266   :  { %v1575_v58 = vadd.f32 %v2839_v63, %v1565_v14 }
 0x267   :  { %v1581_v41 = vsub.f32 0.0, %v1577_v31  ;;  %v1580_v49 = vsub.f32 0.0, %v1576_v60 }
 0x268   :  { %v1579_v13 = vsub.f32 0.0, %v1575_v58 }
 0x269   :  { %v1587_v32 = vmul.f32 1.442695, %v1581_v41  ;;  %v1585_v33 = vmul.f32 1.442695, %v1580_v49 }
 0x26a   :  { %v1583_v29 = vmul.f32 1.442695, %v1579_v13 }
 0x26b   :  { %2805 = vpow2.f32 %v1587_v32 }
 0x26c   :  { %2807 = vpow2.f32 %v1585_v33  ;;  %v1768_v56 = vpop.xlane.xlu1 %1767  ;;  %v1765_v28 = vpop.xlane.xlu0 %1764 }
 0x26d   :  { %2809 = vpow2.f32 %v1583_v29  ;;  %v1776_v24 = vadd.f32 %v2838_v25, %v1768_v56  ;;  %v1775_v42 = vadd.f32 %v2839_v63, %v1765_v28  ;;  %v1574_v46 = vpop.xlane.xlu2 %1573 }
 0x26e   :  { %v1578_v36 = vadd.f32 %v2840_v8, %v1574_v46 }
 0x26f   :  { %v1780_v16 = vsub.f32 0.0, %v1776_v24  ;;  %v1779_v9 = vsub.f32 0.0, %v1775_v42 }
 0x270   :  { %v1582_v37 = vsub.f32 0.0, %v1578_v36 }
 0x271   :  { %v2806_v5 = vpop.eup %2805  ;;  %v1785_v39 = vmul.f32 1.442695, %v1780_v16  ;;  %v1783_v14 = vmul.f32 1.442695, %v1779_v9 }
 0x272   :  { %v2808_v62 = vpop.eup %2807  ;;  %v1593_v48 = vadd.f32 1.0, %v2806_v5  ;;  %v1589_v63 = vmul.f32 1.442695, %v1582_v37 }
 0x273   :  { %v2810_v31 = vpop.eup %2809  ;;  %v4153_v60 = vadd.f32 1.0, %v2808_v62  ;;  %2811 = vpow2.f32 %v1785_v39 }
 0x274   :  { %2813 = vrcp.f32 %v1593_v48  ;;  %v4155_v25 = vadd.f32 1.0, %v2810_v31  ;;  %v1774_v58 = vpop.xlane.xlu0 %1773  ;;  %v1634_v33 = vand.u32 2147483647, %v1593_v48  ;;  %vm1630_vm1 = vweird.f32 %v1593_v48 }
 0x275   :  { %2815 = vrcp.f32 %v4153_v60  ;;  %v1778_v41 = vadd.f32 %v2840_v8, %v1774_v58  ;;  %v1771_v49 = vpop.xlane.xlu2 %1770  ;;  %v1636_v8 = vand.u32 2147483648, %v1593_v48  ;;  %vm1615_vm3 = vweird.f32 %v4153_v60 }
 0x276   :  { %2817 = vrcp.f32 %v4155_v25  ;;  %v1777_v52 = vadd.f32 %v2837_v6, %v1771_v49  ;;  %vm4162_vm2 = vcmp.eq.f32.partialorder %v1634_v33, 8.507059e+37  ;;  %v1619_v39 = vand.u32 2147483647, %v4153_v60 }
 0x277   :  { %2819 = vpow2.f32 %v1783_v14  ;;  %v1782_v13 = vsub.f32 0.0, %v1778_v41  ;;  %v1621_v58 = vand.u32 2147483648, %v4153_v60  ;;  %v1604_v41 = vand.u32 2147483647, %v4155_v25 }
 0x278   :  { %2821 = vpow2.f32 %v1589_v63  ;;  %v1781_v32 = vsub.f32 0.0, %v1777_v52  ;;  %v1606_v33 = vand.u32 2147483648, %v4155_v25  ;;  %vm1620_vm8 = vcmp.eq.f32.partialorder %v1619_v39, 8.507059e+37 }
 0x279   :  { %v2812_v29 = vpop.eup %2811  ;;  %v1789_v56 = vmul.f32 1.442695, %v1782_v13  ;;  %vm1600_vm10 = vweird.f32 %v4155_v25  ;;  %vm1605_vm12 = vcmp.eq.f32.partialorder %v1604_v41, 8.507059e+37 }
 0x27a   :  { %v2814_v28 = vpop.eup %2813  ;;  %v4159_v24 = vadd.f32 1.0, %v2812_v29  ;;  %v1787_v42 = vmul.f32 1.442695, %v1781_v32 }
 0x27b   :  { %v2816_v46 = vpop.eup %2815  ;;  %2823 = vpow2.f32 %v1789_v56  ;;  %v1626_v36 = vmul.f32 %v2814_v28, %v1593_v48  ;;  %vm1631_vm4 = vweird.f32 %v2814_v28 }
 0x27c   :  { %v2818_v16 = vpop.eup %2817  ;;  %2825 = vrcp.f32 %v4159_v24  ;;  %v1611_v9 = vmul.f32 %v2816_v46, %v4153_v60  ;;  %vm1616_vm5 = vweird.f32 %v2816_v46  ;;  %vm1632_vm7 = vmor %vm1630_vm1, %vm1631_vm4 }
 0x27d   :  { %v2820_v37 = vpop.eup %2819  ;;  %2827 = vpow2.f32 %v1787_v42  ;;  %v1627_v5 = vsub.f32 1.0, %v1626_v36  ;;  %v1596_v62 = vmul.f32 %v2818_v16, %v4155_v25  ;;  %vm1601_vm6 = vweird.f32 %v2818_v16  ;;  %vm1617_vm9 = vmor %vm1615_vm3, %vm1616_vm5 }
 0x27e   :  { %v2822_v31 = vpop.eup %2821  ;;  %v4170_v14 = vadd.f32 1.0, %v2820_v37  ;;  %v1612_v63 = vsub.f32 1.0, %v1611_v9  ;;  %v1637_v37 = vor.u32 1.1754944e-38, %v1636_v8  ;;  %vm1602_vm11 = vmor %vm1600_vm10, %vm1601_vm6  ;;  %v1607_v8 = vor.u32 1.1754944e-38, %v1606_v33 }
 0x27f   :  { %v4174_v49 = vadd.f32 1.0, %v2822_v31  ;;  %v1628_v52 = vmul.f32 %v2814_v28, %v1627_v5  ;;  %v1597_v13 = vsub.f32 1.0, %v1596_v62 }
 0x280   :  { %2829 = vrcp.f32 %v4170_v14  ;;  %v1613_v32 = vmul.f32 %v2816_v46, %v1612_v63  ;;  %v1622_v63 = vor.u32 1.1754944e-38, %v1621_v58  ;;  %vm1800_vm15 = vweird.f32 %v4170_v14 }
 0x281   :  { %v2824_v29 = vpop.eup %2823  ;;  %2831 = vrcp.f32 %v4174_v49  ;;  %v1629_v56 = vadd.f32 %v2814_v28, %v1628_v52  ;;  %v1598_v42 = vmul.f32 %v2818_v16, %v1597_v13  ;;  %vm1645_vm0 = vweird.f32 %v4174_v49 }
 0x282   :  { %v4179_v36 = vpop.eup %2825  ;;  %v4181_v9 = vadd.f32 1.0, %v2824_v29  ;;  %v1614_v5 = vadd.f32 %v2816_v46, %v1613_v32  ;;  %v1806_v29 = vand.u32 2147483648, %v4170_v14 }
 0x283   :  { %v2828_v62 = vpop.eup %2827  ;;  %v1633_v31 = vsel %vm1632_vm7, %v2814_v28, %v1629_v56  ;;  %v1599_v34 = vadd.f32 %v2818_v16, %v1598_v42  ;;  %v1811_v58 = vmul.f32 %v4179_v36, %v4159_v24  ;;  %v1804_v42 = vand.u32 2147483647, %v4170_v14 }
 0x284   :  { %v4188_v52 = vadd.f32 1.0, %v2828_v62  ;;  %v1638_v13 = vsel %vm4162_vm2, %v1637_v37, %v1633_v31  ;;  %v1618_v48 = vsel %vm1617_vm9, %v2816_v46, %v1614_v5  ;;  %2833 = vrcp.f32 %v4181_v9 }
 0x285   :  { %1675 = vperm.xlu0 %2804, %v1638_v13   ;;  %v1623_v28 = vsel %vm1620_vm8, %v1622_v63, %v1618_v48  ;;  %v1603_v39 = vsel %vm1602_vm11, %v2818_v16, %v1599_v34  ;;  %v1812_v34 = vsub.f32 1.0, %v1811_v58  ;;  %v1651_v37 = vand.u32 2147483648, %v4174_v49 }
 0x286   :  { %v2830_v60 = vpop.eup %2829  ;;  %2835 = vrcp.f32 %v4188_v52  ;;  %1670 = vperm.xlu2 %2803, %v1623_v28   ;;  %v1608_v25 = vsel %vm1605_vm12, %v1607_v8, %v1603_v39  ;;  %v1649_v31 = vand.u32 2147483647, %v4174_v49  ;;  %v1807_v48 = vor.u32 1.1754944e-38, %v1806_v29 }
 0x287   :  { %v2832_v6 = vpop.eup %2831  ;;  %1665 = vperm.xlu1 %2802, %v1608_v25   ;;  %v1796_v46 = vmul.f32 %v2830_v60, %v4170_v14  ;;  %vm1801_vm13 = vweird.f32 %v2830_v60  ;;  %v1813_v28 = vmul.f32 %v4179_v36, %v1812_v34  ;;  %vm1805_vm2 = vcmp.eq.f32.partialorder %v1804_v42, 8.507059e+37 }
 0x288   :  { %v1641_v32 = vmul.f32 %v2832_v6, %v4174_v49  ;;  %vm1646_vm14 = vweird.f32 %v2832_v6  ;;  %vm1802_vm1 = vmor %vm1800_vm15, %vm1801_vm13  ;;  %v1652_v58 = vor.u32 1.1754944e-38, %v1651_v37  ;;  %vm1650_vm4 = vcmp.eq.f32.partialorder %v1649_v31, 8.507059e+37 }
 0x289   :  { %v1797_v33 = vsub.f32 1.0, %v1796_v46  ;;  %vm1647_vm3 = vmor %vm1645_vm0, %vm1646_vm14  ;;  %v1836_v14 = vand.u32 2147483648, %v4188_v52  ;;  %v1834_v29 = vand.u32 2147483647, %v4188_v52  ;;  %v1814_v34 = vadd.f32 %v4179_v36, %v1813_v28 }
 0x28a   :  { %v1642_v56 = vsub.f32 1.0, %v1641_v32  ;;  %v4200_v16 = vpop.eup %2833  ;;  %vm1816_vm6 = vweird.f32 %v4179_v36  ;;  %vm1830_vm7 = vweird.f32 %v4188_v52  ;;  %vm1815_vm8 = vweird.f32 %v4159_v24 }
 0x28b   :  { %v1798_v41 = vmul.f32 %v2830_v60, %v1797_v33  ;;  %v1841_v39 = vmul.f32 %v4200_v16, %v4181_v9  ;;  %v1837_v37 = vor.u32 1.1754944e-38, %v1836_v14  ;;  %vm1817_vm10 = vmor %vm1815_vm8, %vm1816_vm6  ;;  %vm1835_vm11 = vcmp.eq.f32.partialorder %v1834_v29, 8.507059e+37 }
 0x28c   :  { %v2836_v5 = vpop.eup %2835  ;;  %v1643_v62 = vmul.f32 %v2832_v6, %v1642_v56  ;;  %v1818_v31 = vsel %vm1817_vm10, %v4179_v36, %v1814_v34  ;;  %vm1846_vm13 = vweird.f32 %v4200_v16  ;;  %vm1845_vm14 = vweird.f32 %v4181_v9 }
 0x28d   :  { %v1799_v63 = vadd.f32 %v2830_v60, %v1798_v41  ;;  %v1826_v13 = vmul.f32 %v2836_v5, %v4188_v52  ;;  %vm1831_vm5 = vweird.f32 %v2836_v5  ;;  %v1821_v41 = vand.u32 2147483648, %v4159_v24  ;;  %vm1847_vm15 = vmor %vm1845_vm14, %vm1846_vm13 }
 0x28e   :  { %v1644_v8 = vadd.f32 %v2832_v6, %v1643_v62  ;;  %vm1832_vm9 = vmor %vm1830_vm7, %vm1831_vm5  ;;  %v1860_v34 = vsub.f32 %v4336_v51, %v4080_v30 }
 0x28f   :  { %v1803_v25 = vsel %vm1802_vm1, %v2830_v60, %v1799_v63  ;;  %v1827_v46 = vsub.f32 1.0, %v1826_v13  ;;  %v1842_v60 = vsub.f32 1.0, %v1841_v39 }
 0x290   :  { %v1808_v32 = vsel %vm1805_vm2, %v1807_v48, %v1803_v25  ;;  %v1648_v33 = vsel %vm1647_vm3, %v2832_v6, %v1644_v8  ;;  %v1819_v6 = vand.u32 2147483647, %v4159_v24  ;;  %v1822_v48 = vor.u32 1.1754944e-38, %v1821_v41 }
 0x291   :  { %1865 = vperm.xlu2 %2803, %v1808_v32   ;;  %v1653_v49 = vsel %vm1650_vm4, %v1652_v58, %v1648_v33  ;;  %v1828_v56 = vmul.f32 %v2836_v5, %v1827_v46  ;;  %v1843_v13 = vmul.f32 %v4200_v16, %v1842_v60  ;;  %v1851_v24 = vand.u32 2147483648, %v4181_v9 }
 0x292   :  { %1680 = vperm.xlu1 %2802, %v1653_v49   ;;  %vm1820_vm12 = vcmp.eq.f32.partialorder %v1819_v6, 8.507059e+37  ;;  %v1657_v25 = vsub.f32 %v839_v50, %v4043_v17  ;;  %v1658_v58 = vsub.f32 %v840_v43, %v4045_v55  ;;  %v1856_v50 = vsub.f32 %v4334_v40, %v4058_v23 }
 0x293   :  { %v1829_v42 = vadd.f32 %v2836_v5, %v1828_v56  ;;  %v1823_v8 = vsel %vm1820_vm12, %v1822_v48, %v1818_v31  ;;  %v1844_v52 = vadd.f32 %v4200_v16, %v1843_v13  ;;  %v1852_v28 = vor.u32 1.1754944e-38, %v1851_v24 }
 0x294   :  { %v4337_v6 = vmax.f32 %v3958_v44, 0.0 }
 0x295   :  { %v1833_v62 = vsel %vm1832_vm9, %v2836_v5, %v1829_v42  ;;  %v1849_v5 = vand.u32 2147483647, %v4181_v9  ;;  %v1848_v36 = vsel %vm1847_vm15, %v4200_v16, %v1844_v52 }
 0x296   :  { %v1838_v63 = vsel %vm1835_vm11, %v1837_v37, %v1833_v62  ;;  %v1659_v37 = vsub.f32 %v4337_v6, %v4050_v4  ;;  %v4338_v62 = vmax.f32 %v3961_v53, 0.0 }
 0x297   :  { %vm1850_vm0 = vcmp.eq.f32.partialorder %v1849_v5, 8.507059e+37 }
 0x298   :  { %v1853_v39 = vsel %vm1850_vm0, %v1852_v28, %v1848_v36  ;;  %v1660_v54 = vsub.f32 %v4338_v62, %v4052_v12 }
 0x299   :  { %1875 = vperm.xlu2 %2803, %v1838_v63   ;;  %v1655_v63 = vsub.f32 %v4339_v61, %v4034_v1 }
 0x29a   :  { %1870 = vperm.xlu1 %2802, %v1823_v8  }
 0x2a2   :  { %1880 = vperm.xlu1 %2802, %v1853_v39   ;;  %v4342_v39 = vmax.f32 %v3976_v2, 0.0  ;;  %v4344_v2 = vmax.f32 %v4004_v10, 0.0  ;;  %v4346_v10 = vmax.f32 %v4024_v11, 0.0 }
 0x2e0   :  { %v1671_v46 = vpop.permute.xlu2 %1670 }
 0x2e1   :  { %v1685_v32 = vmul.f32 %v1671_v46, %v1657_v25  ;;  %v1686_v33 = vmul.f32 %v1671_v46, %v1658_v58  ;;  %v1662_v25 = vsub.f32 %v4342_v39, %v4074_v47 }
 0x2e3   :  { %v1693_v9 = vadd.f32 %v1685_v32, %v4043_v17  ;;  %v1694_v14 = vadd.f32 %v1686_v33, %v4045_v55 }
 0x2e5   :  { %v1700_v16 = vpack.c.bf16 %v1694_v14, %v1693_v9  ;;  %v1858_v14 = vsub.f32 %v4344_v2, %v4069_v22 }
 0x2e7   :  { %1704 = vst [vmem:[%s4318_s3 + $0x10] sm:$0xff] %v1700_v16 }
 0x2eb   :  { %v1866_v43 = vpop.permute.xlu2 %1865 }
 0x2ec   :  { %v1883_v49 = vmul.f32 %v1866_v43, %v1855_v35  ;;  %v1884_v56 = vmul.f32 %v1866_v43, %v1856_v50 }
 0x2ee   :  { %v1891_v17 = vadd.f32 %v1883_v49, %v4056_v57  ;;  %v1892_v55 = vadd.f32 %v1884_v56, %v4058_v23  ;;  %v1862_v49 = vsub.f32 %v4346_v10, %v4090_v45 }
 0x2f0   :  { %v1899_v29 = vpack.c.bf16 %v1892_v55, %v1891_v17 }
 0x2f2   :  { %1903 = vst [vmem:[%s4318_s3 + $0x8] sm:$0xff] %v1899_v29 }
 0x2f3   :  { %v1876_v60 = vpop.permute.xlu2 %1875 }
 0x2f4   :  { %v1887_v41 = vmul.f32 %v1876_v60, %v1859_v21  ;;  %v1888_v42 = vmul.f32 %v1876_v60, %v1860_v34 }
 0x2f6   :  { %v1895_v57 = vadd.f32 %v1887_v41, %v4078_v7  ;;  %v1896_v23 = vadd.f32 %v1888_v42, %v4080_v30  ;;  %v4340_v7 = vmax.f32 %v3926_v26, 0.0 }
 0x2f7   :  { %v1676_v31 = vpop.permute.xlu0 %1675 }
 0x2f8   :  { %v1901_v13 = vpack.c.bf16 %v1896_v23, %v1895_v57  ;;  %v1687_v48 = vmul.f32 %v1676_v31, %v1659_v37  ;;  %v1688_v8 = vmul.f32 %v1676_v31, %v1660_v54  ;;  %v1656_v30 = vsub.f32 %v4340_v7, %v4036_v0 }
 0x2f9   :  { %v1666_v52 = vpop.permute.xlu1 %1665 }
 0x2fa   :  { %1905 = vst [vmem:[%s4318_s3 + $0x28] sm:$0xff] %v1901_v13  ;;  %v1695_v44 = vadd.f32 %v1687_v48, %v4050_v4  ;;  %v1696_v53 = vadd.f32 %v1688_v8, %v4052_v12  ;;  %v1683_v24 = vmul.f32 %v1666_v52, %v1655_v63  ;;  %v1684_v5 = vmul.f32 %v1666_v52, %v1656_v30 }
 0x2fb   :  { %v4341_v4 = vmax.f32 %v3974_v59, 0.0  ;;  %v4343_v59 = vmax.f32 %v4001_v38, 0.0  ;;  %v4345_v38 = vmax.f32 %v3989_v3, 0.0 }
 0x2fc   :  { %v1701_v19 = vpack.c.bf16 %v1696_v53, %v1695_v44  ;;  %v1691_v36 = vadd.f32 %v1683_v24, %v4034_v1  ;;  %v1692_v28 = vadd.f32 %v1684_v5, %v4036_v0 }
 0x2fd   :  { %v1661_v12 = vsub.f32 %v4341_v4, %v4076_v15  ;;  %v1857_v9 = vsub.f32 %v4343_v59, %v4066_v27  ;;  %v1861_v43 = vsub.f32 %v4345_v38, %v4088_v20 }
 0x2fe   :  { %1705 = vst [vmem:[%s4318_s3 + $0x20] sm:$0xff] %v1701_v19  ;;  %v1699_v26 = vpack.c.bf16 %v1692_v28, %v1691_v36 }
 0x300   :  { %1703 = vst [vmem:[%s4318_s3] sm:$0xff] %v1699_v26 }
 0x304   :  { %v1681_v1 = vpop.permute.xlu1 %1680 }
 0x305   :  { %v1689_v58 = vmul.f32 %v1681_v1, %v1661_v12  ;;  %v1690_v0 = vmul.f32 %v1681_v1, %v1662_v25 }
 0x307   :  { %v1697_v46 = vadd.f32 %v1689_v58, %v4076_v15  ;;  %v1698_v32 = vadd.f32 %v1690_v0, %v4074_v47 }
 0x309   :  { %v1702_v33 = vpack.c.bf16 %v1698_v32, %v1697_v46 }
 0x30b   :  { %1706 = vst [vmem:[%s4318_s3 + $0x30] sm:$0xff] %v1702_v33 }
 0x30c   :  { %v1871_v16 = vpop.permute.xlu1 %1870 }
 0x30d   :  { %v1885_v35 = vmul.f32 %v1871_v16, %v1857_v9  ;;  %v1886_v40 = vmul.f32 %v1871_v16, %v1858_v14 }
 0x30f   :  { %v1893_v15 = vadd.f32 %v1885_v35, %v4066_v27  ;;  %v1894_v47 = vadd.f32 %v1886_v40, %v4069_v22 }
 0x311   :  { %v1900_v50 = vpack.c.bf16 %v1894_v47, %v1893_v15 }
 0x313   :  { %1904 = vst [vmem:[%s4318_s3 + $0x18] sm:$0xff] %v1900_v50 }
 0x314   :  { %v1881_v56 = vpop.permute.xlu1 %1880 }
 0x315   :  { %v1889_v17 = vmul.f32 %v1881_v56, %v1861_v43  ;;  %v1890_v55 = vmul.f32 %v1881_v56, %v1862_v49 }
 0x317   :  { %v1897_v27 = vadd.f32 %v1889_v17, %v4088_v20  ;;  %v1898_v22 = vadd.f32 %v1890_v55, %v4090_v45 }
 0x319   :  { %v1902_v29 = vpack.c.bf16 %v1898_v22, %v1897_v27 }
 0x31b   :  { %1906 = vst [vmem:[%s4318_s3 + $0x38] sm:$0xff] %v1902_v29 }

</bundles_post_ra>
